<compile_context>
chip_gen: v7x
topology: tpu7x:2x2x1
jax: 0.10.0
libtpu: 0.0.40
codegen_flags: <defaults>
</compile_context>

<pallas_src>
import functools
import math

import jax
import jax.numpy as jnp
from jax import lax
from jax.experimental import pallas as pl
from jax.experimental.pallas import tpu as pltpu

NEG_SLOPE = 0.2
PIXNORM_EPS = 1e-8  # standard PGGAN PixelNormalization epsilon


def _leaky(x):
    return jnp.where(x > 0, x, NEG_SLOPE * x)


def _round_up(n, m):
    return (n + m - 1) // m * m


def latent_transform_kernel(x_ref, w_ref, b_ref, o_ref, *, num_layers):
    """
    x_ref : (TN, Z)     f32 activation tile
    w_ref : (L, Z, W)   bf16 stacked weights, (Cin, Cout) layout, ELR scale baked in
    b_ref : (L, 1, W)   f32 stacked biases
    o_ref : (TN, W)     f32 output tile (lane-dense, W = 256)
    """
    x = x_ref[...]                                            # (TN, Z) f32
    # PixelNormalization over the channel axis (f32), then bf16 for the MXU.
    ms = jnp.mean(x * x, axis=-1, keepdims=True)
    h = (x * lax.rsqrt(ms + PIXNORM_EPS)).astype(jnp.bfloat16)

    # 7x (WSConv2d 1x1 -> LeakyReLU): bf16 MXU matmul, f32 accumulate/epilogue.
    for i in range(num_layers):
        y = jnp.dot(h, w_ref[i], preferred_element_type=jnp.float32)
        z = _leaky(y + b_ref[i])                              # f32 epilogue
        if i + 1 < num_layers:
            h = z.astype(jnp.bfloat16)                        # bf16 between layers
        else:
            o_ref[...] = z                                    # final layer stays f32


def prepare_params(params):
    """Bake the WSConv2d equalized-LR scale sqrt(2/Cin), transpose to (Cin, Cout),
    cast weights to bf16 and stack.  Hoisted out of the forward so it executes
    once per parameter set (not per call)."""
    ws, bs = [], []
    for (w, b) in params:
        cout, cin = w.shape[0], w.shape[1]
        s = math.sqrt(2.0 / cin)
        ws.append((w.reshape(cout, cin) * s).T.astype(jnp.bfloat16))   # (Cin, Cout)
        bs.append(b.reshape(1, cout).astype(jnp.float32))              # (1, Cout)
    return jnp.stack(ws), jnp.stack(bs)          # (L, Cin, Cout) bf16, (L, 1, Cout) f32


def _choose_tile(n):
    """Returns (TN, padded_N)."""
    if n <= 256:
        # Tiny batch: one grid step; ~0.35us per-step overhead would dominate.
        tn = max(_round_up(n, 8), 8)
        return tn, tn
    # Multiple of 256 -> full MXU row occupancy on v6e/v7x (2x256x256) and a
    # clean multiple of 128 for v5e (4x128x128); cap at 512 and keep >= 2 grid
    # steps so v7x megacore sharding has work for both TensorCores.
    tn = min(_round_up(pl.cdiv(n, 2), 256), 512)
    return tn, _round_up(n, tn)


def latent_transformation_forward(latent, w_stack, b_stack, *, z_dim=256, w_dim=256,
                                  normalize_latents=True):
    """latent: (N, z_dim) (or anything reshapeable to it). Returns (N, w_dim, 1, 1)."""
    assert normalize_latents, "kernel is built for the default normalize_latents=True"
    L = w_stack.shape[0]
    assert z_dim == w_dim, "stacked-weight path assumes the module default z_dim == w_dim"
    assert w_stack.shape == (L, z_dim, w_dim) and b_stack.shape == (L, 1, w_dim)

    x = latent.reshape(-1, z_dim).astype(jnp.float32)
    N = x.shape[0]

    TN, n_pad = _choose_tile(N)
    if n_pad != N:
        # Zero-pad rows; pixel-norm of an all-zero row stays 0 (eps keeps rsqrt finite).
        x = jnp.pad(x, ((0, n_pad - N), (0, 0)))
    grid = (n_pad // TN,)

    in_specs = [
        pl.BlockSpec((TN, z_dim), lambda i: (i, 0)),
        # Constant index_maps: fetched once, VMEM-resident across all grid steps.
        pl.BlockSpec((L, z_dim, w_dim), lambda i: (0, 0, 0)),
        pl.BlockSpec((L, 1, w_dim), lambda i: (0, 0, 0)),
    ]
    out_spec = pl.BlockSpec((TN, w_dim), lambda i: (i, 0))

    # Advisory cost estimate so XLA can schedule around the custom call.
    flops = 2 * n_pad * z_dim * w_dim * L
    bytes_accessed = (n_pad * z_dim * 4 + n_pad * w_dim * 4
                      + L * z_dim * w_dim * 2 + L * w_dim * 4)
    cost = pl.CostEstimate(flops=flops, transcendentals=n_pad,
                           bytes_accessed=bytes_accessed)

    kernel = functools.partial(latent_transform_kernel, num_layers=L)
    out = pl.pallas_call(
        kernel,
        out_shape=jax.ShapeDtypeStruct((n_pad, w_dim), jnp.float32),
        grid=grid,
        in_specs=in_specs,
        out_specs=out_spec,
        compiler_params=pltpu.CompilerParams(
            dimension_semantics=("parallel",)),   # shard batch across TCs on v7x
        cost_estimate=cost,
    )(x, w_stack, b_stack)

    if n_pad != N:
        out = out[:N]
    return out.reshape(N, w_dim, 1, 1)


def reference_forward(latent, params, *, z_dim=256):
    """Pure-JAX f32 reference mirroring the PyTorch module (NCHW 1x1 convs)."""
    N = latent.reshape(-1, z_dim).shape[0]
    x = latent.reshape(N, z_dim, 1, 1).astype(jnp.float32)
    x = x * lax.rsqrt(jnp.mean(x * x, axis=1, keepdims=True) + PIXNORM_EPS)
    dn = ("NCHW", "OIHW", "NCHW")
    for (w, b) in params:
        cin = w.shape[1]
        s = math.sqrt(2.0 / cin)
        x = lax.conv_general_dilated(x, w * s, (1, 1), "VALID",
                                     dimension_numbers=dn,
                                     precision=lax.Precision.HIGHEST)
        x = _leaky(x + b[None, :, None, None])
    return x


def matched_reference(latent, params, *, z_dim=256):
    """Pure-JAX reference using the SAME bf16-input / f32-accumulate math."""
    x = latent.reshape(-1, z_dim).astype(jnp.float32)
    h = x * lax.rsqrt(jnp.mean(x * x, axis=-1, keepdims=True) + PIXNORM_EPS)
    h = h.astype(jnp.bfloat16)
    L = len(params)
    for i, (w, b) in enumerate(params):
        cout, cin = w.shape[0], w.shape[1]
        s = math.sqrt(2.0 / cin)
        wm = (w.reshape(cout, cin) * s).T.astype(jnp.bfloat16)
        y = jnp.dot(h, wm, preferred_element_type=jnp.float32)
        z = _leaky(y + b.reshape(1, cout))
        h = z.astype(jnp.bfloat16) if i + 1 < L else z
    return h


def _check(out2d, latent, params, Z):
    ref_bf16 = jax.block_until_ready(matched_reference(latent, params, z_dim=Z))
    max_err = jnp.max(jnp.abs(out2d - ref_bf16))
    assert jnp.allclose(out2d, ref_bf16, rtol=1e-3, atol=1e-3), (
        f"mismatch vs bf16-matched reference: max abs err {max_err}")
    ref_f32 = jax.block_until_ready(
        reference_forward(latent, params, z_dim=Z)).reshape(out2d.shape)
    rel_l2 = jnp.linalg.norm(out2d - ref_f32) / jnp.linalg.norm(ref_f32)
    assert rel_l2 < 0.05, f"relative L2 error vs f32 reference too large: {rel_l2}"


if __name__ == "__main__":
    Z = W = 256            # module defaults (z_dim = w_dim = 256)
    NUM_LAYERS = 7

    key = jax.random.PRNGKey(0)
    keys = jax.random.split(key, 2 + 2 * NUM_LAYERS)

    # WSConv2d params: weights ~ N(0,1); small NONZERO biases so the f32 bias +
    # LeakyReLU epilogue is actually exercised (ELR scale applied at forward).
    params = []
    for i in range(NUM_LAYERS):
        cin = Z
        cout = W if i == NUM_LAYERS - 1 else Z
        w = jax.random.normal(keys[2 + 2 * i], (cout, cin, 1, 1), dtype=jnp.float32)
        b = 0.1 * jax.random.normal(keys[3 + 2 * i], (cout,), dtype=jnp.float32)
        params.append((w, b))

    # Hoisted, one-time weight preprocessing (not inside the forward).
    w_stack, b_stack = jax.block_until_ready(prepare_params(params))

    # 1) Tiny batch (N=16): single grid step, TN=16.
    latent = jax.random.normal(keys[0], (16, Z), dtype=jnp.float32)
    out = jax.block_until_ready(
        latent_transformation_forward(latent, w_stack, b_stack, z_dim=Z, w_dim=W))
    assert out.shape == (16, W, 1, 1), out.shape
    _check(out.reshape(16, W), latent, params, Z)

    # 2) Ragged batch (N=300): TN=256, padded to 512, grid=(2,) -> exercises the
    #    padded/tiled path and v7x dual-TensorCore sharding.
    latent2 = jax.random.normal(keys[1], (300, Z), dtype=jnp.float32)
    out2 = jax.block_until_ready(
        latent_transformation_forward(latent2, w_stack, b_stack, z_dim=Z, w_dim=W))
    assert out2.shape == (300, W, 1, 1), out2.shape
    _check(out2.reshape(300, W), latent2, params, Z)

    print("KERNEL_OK")
</pallas_src>

<mosaic_0001>
module attributes {stable_mosaic.version = 11 : i64} {
  func.func @latent_transform_kernel(%arg0: i32, %arg1: memref<16x256xf32, #tpu.memory_space<vmem>>, %arg2: memref<7x256x256xbf16, #tpu.memory_space<vmem>>, %arg3: memref<7x1x256xf32, #tpu.memory_space<vmem>>, %arg4: memref<16x256xf32, #tpu.memory_space<vmem>>) attributes {dimension_semantics = [#tpu.dimension_semantics<parallel>], iteration_bounds = array<i64: 1>, scalar_prefetch = 0 : i64, scratch_operands = 0 : i64, tpu.core_type = #tpu.core_type<tc>, window_params = [{transform_indices = @transform_0, window_bounds = array<i64: 16, 256>}, {pipeline_mode = #tpu.pipeline_mode<synchronous>, transform_indices = @transform_1, window_bounds = array<i64: 7, 256, 256>}, {pipeline_mode = #tpu.pipeline_mode<synchronous>, transform_indices = @transform_2, window_bounds = array<i64: 7, 1, 256>}, {transform_indices = @transform_3, window_bounds = array<i64: 16, 256>}]} {
    %c0 = arith.constant 0 : index
    %c0_0 = arith.constant 0 : index
    %0 = vector.load %arg1[%c0, %c0_0] : memref<16x256xf32, #tpu.memory_space<vmem>>, vector<16x256xf32>
    %1 = arith.mulf %0, %0 : vector<16x256xf32>
    %cst = arith.constant dense<0.000000e+00> : vector<16xf32>
    %2 = vector.multi_reduction <add>, %1, %cst [1] : vector<16x256xf32> to vector<16xf32>
    %3 = vector.shape_cast %2 : vector<16xf32> to vector<16x1xf32>
    %cst_1 = arith.constant 2.560000e+02 : f32
    %4 = vector.broadcast %cst_1 : f32 to vector<16x1xf32>
    %5 = arith.divf %3, %4 : vector<16x1xf32>
    %cst_2 = arith.constant 9.99999993E-9 : f32
    %6 = vector.broadcast %cst_2 : f32 to vector<16x1xf32>
    %7 = arith.addf %5, %6 : vector<16x1xf32>
    %8 = math.rsqrt %7 : vector<16x1xf32>
    %9 = vector.broadcast %8 : vector<16x1xf32> to vector<16x256xf32>
    %10 = arith.mulf %0, %9 : vector<16x256xf32>
    %11 = arith.truncf %10 : vector<16x256xf32> to vector<16x256xbf16>
    %c0_3 = arith.constant 0 : index
    %c0_4 = arith.constant 0 : index
    %c0_5 = arith.constant 0 : index
    %12 = vector.load %arg2[%c0_3, %c0_4, %c0_5] : memref<7x256x256xbf16, #tpu.memory_space<vmem>>, vector<1x256x256xbf16>
    %13 = vector.shape_cast %12 : vector<1x256x256xbf16> to vector<256x256xbf16>
    %cst_6 = arith.constant dense<0.000000e+00> : vector<16x256xf32>
    %14 = tpu.matmul %11, %13, %cst_6 {dimension_numbers = #tpu.dot_dimension_numbers<[1], [0], [0], [1], [0, 0, 1, 1], [], []>} : vector<16x256xbf16>, vector<256x256xbf16>, vector<16x256xf32> -> vector<16x256xf32>
    %c0_7 = arith.constant 0 : index
    %c0_8 = arith.constant 0 : index
    %c0_9 = arith.constant 0 : index
    %15 = vector.load %arg3[%c0_7, %c0_8, %c0_9] : memref<7x1x256xf32, #tpu.memory_space<vmem>>, vector<1x1x256xf32>
    %16 = vector.shape_cast %15 : vector<1x1x256xf32> to vector<1x256xf32>
    %17 = vector.broadcast %16 : vector<1x256xf32> to vector<16x256xf32>
    %18 = arith.addf %14, %17 : vector<16x256xf32>
    %cst_10 = arith.constant 0.000000e+00 : f32
    %19 = vector.broadcast %cst_10 : f32 to vector<16x256xf32>
    %20 = arith.cmpf ogt, %18, %19 : vector<16x256xf32>
    %cst_11 = arith.constant 2.000000e-01 : f32
    %21 = vector.broadcast %cst_11 : f32 to vector<16x256xf32>
    %22 = arith.mulf %21, %18 : vector<16x256xf32>
    %23 = arith.select %20, %18, %22 : vector<16x256xi1>, vector<16x256xf32>
    %24 = arith.truncf %23 : vector<16x256xf32> to vector<16x256xbf16>
    %c1 = arith.constant 1 : index
    %c0_12 = arith.constant 0 : index
    %c0_13 = arith.constant 0 : index
    %25 = vector.load %arg2[%c1, %c0_12, %c0_13] : memref<7x256x256xbf16, #tpu.memory_space<vmem>>, vector<1x256x256xbf16>
    %26 = vector.shape_cast %25 : vector<1x256x256xbf16> to vector<256x256xbf16>
    %cst_14 = arith.constant dense<0.000000e+00> : vector<16x256xf32>
    %27 = tpu.matmul %24, %26, %cst_14 {dimension_numbers = #tpu.dot_dimension_numbers<[1], [0], [0], [1], [0, 0, 1, 1], [], []>} : vector<16x256xbf16>, vector<256x256xbf16>, vector<16x256xf32> -> vector<16x256xf32>
    %c1_15 = arith.constant 1 : index
    %c0_16 = arith.constant 0 : index
    %c0_17 = arith.constant 0 : index
    %28 = vector.load %arg3[%c1_15, %c0_16, %c0_17] : memref<7x1x256xf32, #tpu.memory_space<vmem>>, vector<1x1x256xf32>
    %29 = vector.shape_cast %28 : vector<1x1x256xf32> to vector<1x256xf32>
    %30 = vector.broadcast %29 : vector<1x256xf32> to vector<16x256xf32>
    %31 = arith.addf %27, %30 : vector<16x256xf32>
    %cst_18 = arith.constant 0.000000e+00 : f32
    %32 = vector.broadcast %cst_18 : f32 to vector<16x256xf32>
    %33 = arith.cmpf ogt, %31, %32 : vector<16x256xf32>
    %cst_19 = arith.constant 2.000000e-01 : f32
    %34 = vector.broadcast %cst_19 : f32 to vector<16x256xf32>
    %35 = arith.mulf %34, %31 : vector<16x256xf32>
    %36 = arith.select %33, %31, %35 : vector<16x256xi1>, vector<16x256xf32>
    %37 = arith.truncf %36 : vector<16x256xf32> to vector<16x256xbf16>
    %c2 = arith.constant 2 : index
    %c0_20 = arith.constant 0 : index
    %c0_21 = arith.constant 0 : index
    %38 = vector.load %arg2[%c2, %c0_20, %c0_21] : memref<7x256x256xbf16, #tpu.memory_space<vmem>>, vector<1x256x256xbf16>
    %39 = vector.shape_cast %38 : vector<1x256x256xbf16> to vector<256x256xbf16>
    %cst_22 = arith.constant dense<0.000000e+00> : vector<16x256xf32>
    %40 = tpu.matmul %37, %39, %cst_22 {dimension_numbers = #tpu.dot_dimension_numbers<[1], [0], [0], [1], [0, 0, 1, 1], [], []>} : vector<16x256xbf16>, vector<256x256xbf16>, vector<16x256xf32> -> vector<16x256xf32>
    %c2_23 = arith.constant 2 : index
    %c0_24 = arith.constant 0 : index
    %c0_25 = arith.constant 0 : index
    %41 = vector.load %arg3[%c2_23, %c0_24, %c0_25] : memref<7x1x256xf32, #tpu.memory_space<vmem>>, vector<1x1x256xf32>
    %42 = vector.shape_cast %41 : vector<1x1x256xf32> to vector<1x256xf32>
    %43 = vector.broadcast %42 : vector<1x256xf32> to vector<16x256xf32>
    %44 = arith.addf %40, %43 : vector<16x256xf32>
    %cst_26 = arith.constant 0.000000e+00 : f32
    %45 = vector.broadcast %cst_26 : f32 to vector<16x256xf32>
    %46 = arith.cmpf ogt, %44, %45 : vector<16x256xf32>
    %cst_27 = arith.constant 2.000000e-01 : f32
    %47 = vector.broadcast %cst_27 : f32 to vector<16x256xf32>
    %48 = arith.mulf %47, %44 : vector<16x256xf32>
    %49 = arith.select %46, %44, %48 : vector<16x256xi1>, vector<16x256xf32>
    %50 = arith.truncf %49 : vector<16x256xf32> to vector<16x256xbf16>
    %c3 = arith.constant 3 : index
    %c0_28 = arith.constant 0 : index
    %c0_29 = arith.constant 0 : index
    %51 = vector.load %arg2[%c3, %c0_28, %c0_29] : memref<7x256x256xbf16, #tpu.memory_space<vmem>>, vector<1x256x256xbf16>
    %52 = vector.shape_cast %51 : vector<1x256x256xbf16> to vector<256x256xbf16>
    %cst_30 = arith.constant dense<0.000000e+00> : vector<16x256xf32>
    %53 = tpu.matmul %50, %52, %cst_30 {dimension_numbers = #tpu.dot_dimension_numbers<[1], [0], [0], [1], [0, 0, 1, 1], [], []>} : vector<16x256xbf16>, vector<256x256xbf16>, vector<16x256xf32> -> vector<16x256xf32>
    %c3_31 = arith.constant 3 : index
    %c0_32 = arith.constant 0 : index
    %c0_33 = arith.constant 0 : index
    %54 = vector.load %arg3[%c3_31, %c0_32, %c0_33] : memref<7x1x256xf32, #tpu.memory_space<vmem>>, vector<1x1x256xf32>
    %55 = vector.shape_cast %54 : vector<1x1x256xf32> to vector<1x256xf32>
    %56 = vector.broadcast %55 : vector<1x256xf32> to vector<16x256xf32>
    %57 = arith.addf %53, %56 : vector<16x256xf32>
    %cst_34 = arith.constant 0.000000e+00 : f32
    %58 = vector.broadcast %cst_34 : f32 to vector<16x256xf32>
    %59 = arith.cmpf ogt, %57, %58 : vector<16x256xf32>
    %cst_35 = arith.constant 2.000000e-01 : f32
    %60 = vector.broadcast %cst_35 : f32 to vector<16x256xf32>
    %61 = arith.mulf %60, %57 : vector<16x256xf32>
    %62 = arith.select %59, %57, %61 : vector<16x256xi1>, vector<16x256xf32>
    %63 = arith.truncf %62 : vector<16x256xf32> to vector<16x256xbf16>
    %c4 = arith.constant 4 : index
    %c0_36 = arith.constant 0 : index
    %c0_37 = arith.constant 0 : index
    %64 = vector.load %arg2[%c4, %c0_36, %c0_37] : memref<7x256x256xbf16, #tpu.memory_space<vmem>>, vector<1x256x256xbf16>
    %65 = vector.shape_cast %64 : vector<1x256x256xbf16> to vector<256x256xbf16>
    %cst_38 = arith.constant dense<0.000000e+00> : vector<16x256xf32>
    %66 = tpu.matmul %63, %65, %cst_38 {dimension_numbers = #tpu.dot_dimension_numbers<[1], [0], [0], [1], [0, 0, 1, 1], [], []>} : vector<16x256xbf16>, vector<256x256xbf16>, vector<16x256xf32> -> vector<16x256xf32>
    %c4_39 = arith.constant 4 : index
    %c0_40 = arith.constant 0 : index
    %c0_41 = arith.constant 0 : index
    %67 = vector.load %arg3[%c4_39, %c0_40, %c0_41] : memref<7x1x256xf32, #tpu.memory_space<vmem>>, vector<1x1x256xf32>
    %68 = vector.shape_cast %67 : vector<1x1x256xf32> to vector<1x256xf32>
    %69 = vector.broadcast %68 : vector<1x256xf32> to vector<16x256xf32>
    %70 = arith.addf %66, %69 : vector<16x256xf32>
    %cst_42 = arith.constant 0.000000e+00 : f32
    %71 = vector.broadcast %cst_42 : f32 to vector<16x256xf32>
    %72 = arith.cmpf ogt, %70, %71 : vector<16x256xf32>
    %cst_43 = arith.constant 2.000000e-01 : f32
    %73 = vector.broadcast %cst_43 : f32 to vector<16x256xf32>
    %74 = arith.mulf %73, %70 : vector<16x256xf32>
    %75 = arith.select %72, %70, %74 : vector<16x256xi1>, vector<16x256xf32>
    %76 = arith.truncf %75 : vector<16x256xf32> to vector<16x256xbf16>
    %c5 = arith.constant 5 : index
    %c0_44 = arith.constant 0 : index
    %c0_45 = arith.constant 0 : index
    %77 = vector.load %arg2[%c5, %c0_44, %c0_45] : memref<7x256x256xbf16, #tpu.memory_space<vmem>>, vector<1x256x256xbf16>
    %78 = vector.shape_cast %77 : vector<1x256x256xbf16> to vector<256x256xbf16>
    %cst_46 = arith.constant dense<0.000000e+00> : vector<16x256xf32>
    %79 = tpu.matmul %76, %78, %cst_46 {dimension_numbers = #tpu.dot_dimension_numbers<[1], [0], [0], [1], [0, 0, 1, 1], [], []>} : vector<16x256xbf16>, vector<256x256xbf16>, vector<16x256xf32> -> vector<16x256xf32>
    %c5_47 = arith.constant 5 : index
    %c0_48 = arith.constant 0 : index
    %c0_49 = arith.constant 0 : index
    %80 = vector.load %arg3[%c5_47, %c0_48, %c0_49] : memref<7x1x256xf32, #tpu.memory_space<vmem>>, vector<1x1x256xf32>
    %81 = vector.shape_cast %80 : vector<1x1x256xf32> to vector<1x256xf32>
    %82 = vector.broadcast %81 : vector<1x256xf32> to vector<16x256xf32>
    %83 = arith.addf %79, %82 : vector<16x256xf32>
    %cst_50 = arith.constant 0.000000e+00 : f32
    %84 = vector.broadcast %cst_50 : f32 to vector<16x256xf32>
    %85 = arith.cmpf ogt, %83, %84 : vector<16x256xf32>
    %cst_51 = arith.constant 2.000000e-01 : f32
    %86 = vector.broadcast %cst_51 : f32 to vector<16x256xf32>
    %87 = arith.mulf %86, %83 : vector<16x256xf32>
    %88 = arith.select %85, %83, %87 : vector<16x256xi1>, vector<16x256xf32>
    %89 = arith.truncf %88 : vector<16x256xf32> to vector<16x256xbf16>
    %c6 = arith.constant 6 : index
    %c0_52 = arith.constant 0 : index
    %c0_53 = arith.constant 0 : index
    %90 = vector.load %arg2[%c6, %c0_52, %c0_53] : memref<7x256x256xbf16, #tpu.memory_space<vmem>>, vector<1x256x256xbf16>
    %91 = vector.shape_cast %90 : vector<1x256x256xbf16> to vector<256x256xbf16>
    %cst_54 = arith.constant dense<0.000000e+00> : vector<16x256xf32>
    %92 = tpu.matmul %89, %91, %cst_54 {dimension_numbers = #tpu.dot_dimension_numbers<[1], [0], [0], [1], [0, 0, 1, 1], [], []>} : vector<16x256xbf16>, vector<256x256xbf16>, vector<16x256xf32> -> vector<16x256xf32>
    %c6_55 = arith.constant 6 : index
    %c0_56 = arith.constant 0 : index
    %c0_57 = arith.constant 0 : index
    %93 = vector.load %arg3[%c6_55, %c0_56, %c0_57] : memref<7x1x256xf32, #tpu.memory_space<vmem>>, vector<1x1x256xf32>
    %94 = vector.shape_cast %93 : vector<1x1x256xf32> to vector<1x256xf32>
    %95 = vector.broadcast %94 : vector<1x256xf32> to vector<16x256xf32>
    %96 = arith.addf %92, %95 : vector<16x256xf32>
    %cst_58 = arith.constant 0.000000e+00 : f32
    %97 = vector.broadcast %cst_58 : f32 to vector<16x256xf32>
    %98 = arith.cmpf ogt, %96, %97 : vector<16x256xf32>
    %cst_59 = arith.constant 2.000000e-01 : f32
    %99 = vector.broadcast %cst_59 : f32 to vector<16x256xf32>
    %100 = arith.mulf %99, %96 : vector<16x256xf32>
    %101 = arith.select %98, %96, %100 : vector<16x256xi1>, vector<16x256xf32>
    %c0_60 = arith.constant 0 : index
    %c0_61 = arith.constant 0 : index
    %102 = vector.load %arg4[%c0_60, %c0_61] : memref<16x256xf32, #tpu.memory_space<vmem>>, vector<16x256xf32>
    tpu.vector_store %arg4[%c0_60, %c0_61], %101 {strides = array<i32>} : memref<16x256xf32, #tpu.memory_space<vmem>>, vector<16x256xf32>,
    return
  }
  func.func @transform_0(%arg0: i32) -> (i32, i32) {
    %c0_i32 = arith.constant 0 : i32
    %c0_i32_0 = arith.constant 0 : i32
    return %arg0, %c0_i32 : i32, i32
  }
  func.func @transform_1(%arg0: i32) -> (i32, i32, i32) {
    %c0_i32 = arith.constant 0 : i32
    %c0_i32_0 = arith.constant 0 : i32
    %c0_i32_1 = arith.constant 0 : i32
    %c0_i32_2 = arith.constant 0 : i32
    return %c0_i32, %c0_i32_0, %c0_i32_1 : i32, i32, i32
  }
  func.func @transform_2(%arg0: i32) -> (i32, i32, i32) {
    %c0_i32 = arith.constant 0 : i32
    %c0_i32_0 = arith.constant 0 : i32
    %c0_i32_1 = arith.constant 0 : i32
    %c0_i32_2 = arith.constant 0 : i32
    return %c0_i32, %c0_i32_0, %c0_i32_1 : i32, i32, i32
  }
  func.func @transform_3(%arg0: i32) -> (i32, i32) {
    %c0_i32 = arith.constant 0 : i32
    %c0_i32_0 = arith.constant 0 : i32
    return %arg0, %c0_i32 : i32, i32
  }
}

</mosaic_0001>

<bundles_post_ra>
// kernel: tpu_custom_call.1
= control target key start
LH: loop header
LB: loop body
LE: loop exit
PB: predicated region body
PF: predicated region fallthrough
CT: control target
= control target key end

     0   :  { %8 = vsyncpa [#allocation3], 0  ;;  %s2732_s0 = inlined_call_operand.hbm [shape: f32[16,256], index: 0, kind: input, shape index: {}]   ;;  %s2733_s1 = inlined_call_operand.hbm [shape: bf16[7,256,256], index: 1, kind: input, shape index: {}]   ;;  %s2734_s2 = inlined_call_operand.hbm [shape: f32[7,1,256], index: 2, kind: input, shape index: {}]   ;;  %s2735_s3 = inlined_call_operand.hbm [shape: f32[16,256], index: 3, kind: output, shape index: {}]  }
   0x1   :  { %9 = vsyncpa [#allocation6], 0 }
   0x2   :  { %10 = vsyncpa [#allocation4], 0  ;;  %s2610_s12 = smov [#allocation5]   ;;  %s2516_s16 = scalar_lea.hbm %s2733_s1, 28672 }
   0x3   :  { %s28_s13 = sshll.u32 %s2610_s12, 4  ;;  %p2517_p0 = scmp.ne.s32.totalorder %s2733_s1, %s2516_s16  ;;  %s29_s13 = int_to_ptr.vmem [resolvable:$true] %s28_s13 }
   0x4   :  { %p2520_p1 = scmp.lt.u32.totalorder %s2516_s16, %s2733_s1 }
   0x6   :  { %p2522_p2 = pnand %p2520_p1, %p2517_p0 }
   0x8   :  { %2525 = shalt.err (!%p2522_p2)
}
   0x9   :  { %s2526_s21 = scalar_lea.vmem %s29_s13, 28672  ;;  %p2531_p4 = scmp.lt.s32.totalorder %s29_s13, %s29_s13 }
   0xa   :  { %p2527_p3 = scmp.ne.s32.totalorder %s29_s13, %s2526_s21  ;;  %p2532_p5 = scmp.lt.s32.totalorder %s2526_s21, %s2526_s21 }
   0xc   :  { %p2533_p6 = por %p2532_p5, %p2531_p4 }
   0xe   :  { %p2534_p7 = pnand %p2533_p6, %p2527_p3 }
  0x10   :  { %2537 = shalt.err (!%p2534_p7)
}
  0x11   :  { %s2611_s22 = smov 128   ;;  %s2612_s23 = smov 8  }
  0x12   :  { %34 = dma.hbm_to_vmem [thread:$0]  %s2733_s1, 28672, %s29_s13, [#allocation6], %s2611_s22, %s2611_s22, %s2612_s23  }
  0x13   :  { %s2613_s26 = smov [#allocation2]   ;;  %s2538_s30 = scalar_lea.hbm %s2732_s0, 512 }
  0x14   :  { %s16_s27 = sshll.u32 %s2613_s26, 4  ;;  %p2539_p8 = scmp.ne.s32.totalorder %s2732_s0, %s2538_s30  ;;  %s17_s27 = int_to_ptr.vmem [resolvable:$true] %s16_s27 }
  0x15   :  { %p2542_p9 = scmp.lt.u32.totalorder %s2538_s30, %s2732_s0 }
  0x17   :  { %p2544_p10 = pnand %p2542_p9, %p2539_p8 }
  0x19   :  { %2547 = shalt.err (!%p2544_p10)
}
  0x1a   :  { %s2548_s8 = scalar_lea.vmem %s17_s27, 512  ;;  %p2553_p12 = scmp.lt.s32.totalorder %s17_s27, %s17_s27 }
  0x1b   :  { %p2549_p11 = scmp.ne.s32.totalorder %s17_s27, %s2548_s8  ;;  %p2554_p13 = scmp.lt.s32.totalorder %s2548_s8, %s2548_s8 }
  0x1d   :  { %p2555_p0 = por %p2554_p13, %p2553_p12 }
  0x1f   :  { %p2556_p1 = pnand %p2555_p0, %p2549_p11 }
  0x21   :  { %2559 = shalt.err (!%p2556_p1)
}
  0x22   :  { %s2614_s1 = smov 256   ;;  %s2615_s9 = smov 16  }
  0x23   :  { %22 = dma.hbm_to_vmem [thread:$0]  %s2732_s0, 512, %s17_s27, [#allocation3], %s2614_s1, %s2614_s1, %s2615_s9  }
  0x24   :  { %s2616_s12 = smov [#allocation7]   ;;  %s2560_s16 = scalar_lea.hbm %s2734_s2, 224 }
  0x25   :  { %s40_s13 = sshll.u32 %s2616_s12, 4  ;;  %p2561_p2 = scmp.ne.s32.totalorder %s2734_s2, %s2560_s16  ;;  %s41_s13 = int_to_ptr.vmem [resolvable:$true] %s40_s13 }
  0x26   :  { %p2564_p3 = scmp.lt.u32.totalorder %s2560_s16, %s2734_s2 }
  0x28   :  { %p2566_p4 = pnand %p2564_p3, %p2561_p2 }
  0x2a   :  { %2569 = shalt.err (!%p2566_p4)
}
  0x2b   :  { %s2570_s21 = scalar_lea.vmem %s41_s13, 224  ;;  %p2575_p6 = scmp.lt.s32.totalorder %s41_s13, %s41_s13 }
  0x2c   :  { %p2571_p5 = scmp.ne.s32.totalorder %s41_s13, %s2570_s21  ;;  %p2576_p7 = scmp.lt.s32.totalorder %s2570_s21, %s2570_s21 }
  0x2e   :  { %p2577_p8 = por %p2576_p7, %p2575_p6 }
  0x30   :  { %p2578_p9 = pnand %p2577_p8, %p2571_p5 }
  0x32   :  { %2581 = shalt.err (!%p2578_p9)
}
  0x33   :  { %s2617_s0 = smov 32   ;;  %s2618_s22 = smov 2  }
  0x34   :  { %46 = dma.hbm_to_vmem [thread:$0]  %s2734_s2, 224, %s41_s13, [#allocation6], %s2617_s0, %s2617_s0, %s2618_s22  }
  0x35   :  { %2604 = dma.done.wait [#allocation3], 512  }
  0x36   :  { %2605 = vsyncadd [#allocation3], 4294966784 }
  0x37   :  { %2606 = dma.done.wait [#allocation6], 28896  }
  0x38   :  { %2607 = vsyncadd [#allocation6], 4294938400  ;;  %v2679_v0 = vld [vmem:[#allocation2] sm:$0xff]  ;;  %v2681_v1 = vld [vmem:[#allocation2 + $0x8] sm:$0xff]  ;;  %s2619_s2 = smov [#allocation8]  }
  0x39   :  { %v2683_v2 = vld [vmem:[#allocation2 + $0x10] sm:$0xff]  ;;  %v60_v3 = vmul.f32 %v2679_v0, %v2679_v0  ;;  %v61_v4 = vmul.f32 %v2681_v1, %v2681_v1  ;;  %v2689_v5 = vld [vmem:[#allocation2 + $0x18] sm:$0xff]  ;;  %v2176_v8 = vld [vmem:[#allocation5 + $0x4] ss:$8 sps:$4 sm:$0xff]   ;;  %s1929_s25 = sshll.u32 %s2619_s2, 4  ;;  %s1930_s25 = int_to_ptr.vmem [resolvable:$true] %s1929_s25 }
  0x3a   :  { %v62_v6 = vmul.f32 %v2683_v2, %v2683_v2  ;;  %v63_v7 = vmul.f32 %v2689_v5, %v2689_v5  ;;  %v2178_v9 = vld [vmem:[#allocation5] ss:$8 sps:$4 sm:$0xff]   ;;  %v2179_v11 = vld [vmem:[#allocation5 + $0x14] ss:$8 sps:$4 sm:$0xff]   ;;  %287 = vmatprep.subr.bf16.mxu0 %v2176_v8  ;;  %v2181_v13 = vld [vmem:[#allocation5 + $0x10] ss:$8 sps:$4 sm:$0xff]   ;;  %p2587_p11 = scmp.lt.s32.totalorder %s1930_s25, %s1930_s25 }
  0x3b   :  { %v64_v10 = vadd.f32 %v61_v4, %v60_v3  ;;  %288 = vmatpush1.bf16.msra.mxu0 %v2178_v9  ;;  %v2182_v14 = vld [vmem:[#allocation5 + $0x24] ss:$8 sps:$4 sm:$0xff]   ;;  %v2184_v15 = vld [vmem:[#allocation5 + $0x20] ss:$8 sps:$4 sm:$0xff]   ;;  %v2185_v16 = vld [vmem:[#allocation5 + $0x34] ss:$8 sps:$4 sm:$0xff]  }
  0x3c   :  { %v67_v12 = vadd.f32 %v63_v7, %v62_v6  ;;  %289 = vmatprep.subr.bf16.mxu0 %v2179_v11  ;;  %v2187_v17 = vld [vmem:[#allocation5 + $0x30] ss:$8 sps:$4 sm:$0xff]   ;;  %v2188_v18 = vld [vmem:[#allocation5 + $0x44] ss:$8 sps:$4 sm:$0xff]   ;;  %v2190_v19 = vld [vmem:[#allocation5 + $0x40] ss:$8 sps:$4 sm:$0xff]  }
  0x3d   :  { %65 = vadd.xlane.f32.xlu0 %v64_v10  ;;  %v2191_v20 = vld [vmem:[#allocation5 + $0x54] ss:$8 sps:$4 sm:$0xff]   ;;  %v2193_v21 = vld [vmem:[#allocation5 + $0x50] ss:$8 sps:$4 sm:$0xff]   ;;  %v2194_v22 = vld [vmem:[#allocation5 + $0x64] ss:$8 sps:$4 sm:$0xff]  }
  0x3e   :  { %v2196_v23 = vld [vmem:[#allocation5 + $0x60] ss:$8 sps:$4 sm:$0xff]   ;;  %v2197_v24 = vld [vmem:[#allocation5 + $0x74] ss:$8 sps:$4 sm:$0xff]   ;;  %v2199_v25 = vld [vmem:[#allocation5 + $0x70] ss:$8 sps:$4 sm:$0xff]  }
  0x3f   :  { %290 = vmatpush1.bf16.msra.mxu0 %v2181_v13  ;;  %v2200_v26 = vld [vmem:[#allocation5 + $0x84] ss:$8 sps:$4 sm:$0xff]   ;;  %v2202_v27 = vld [vmem:[#allocation5 + $0x80] ss:$8 sps:$4 sm:$0xff]   ;;  %v2203_v28 = vld [vmem:[#allocation5 + $0x94] ss:$8 sps:$4 sm:$0xff]  }
  0x40   :  { %291 = vmatprep.subr.bf16.mxu0 %v2182_v14  ;;  %v2205_v29 = vld [vmem:[#allocation5 + $0x90] ss:$8 sps:$4 sm:$0xff]   ;;  %v2206_v30 = vld [vmem:[#allocation5 + $0xa4] ss:$8 sps:$4 sm:$0xff]   ;;  %v2208_v31 = vld [vmem:[#allocation5 + $0xa0] ss:$8 sps:$4 sm:$0xff]  }
  0x41   :  { %68 = vadd.xlane.f32.xlu0 %v67_v12  ;;  %v2209_v32 = vld [vmem:[#allocation5 + $0xb4] ss:$8 sps:$4 sm:$0xff]   ;;  %v2224_v33 = vld [vmem:[#allocation5 + $0x104] ss:$8 sps:$4 sm:$0xff]   ;;  %v2226_v34 = vld [vmem:[#allocation5 + $0x100] ss:$8 sps:$4 sm:$0xff]  }
  0x42   :  { %v2227_v35 = vld [vmem:[#allocation5 + $0x114] ss:$8 sps:$4 sm:$0xff]   ;;  %v2211_v36 = vld [vmem:[#allocation5 + $0xb0] ss:$8 sps:$4 sm:$0xff]   ;;  %550 = vmatprep.subr.bf16.mxu1 %v2224_v33  ;;  %v2212_v37 = vld [vmem:[#allocation5 + $0xc4] ss:$8 sps:$4 sm:$0xff]  }
  0x43   :  { %292 = vmatpush1.bf16.msra.mxu0 %v2184_v15  ;;  %551 = vmatpush1.bf16.msra.mxu1 %v2226_v34  ;;  %v2229_v38 = vld [vmem:[#allocation5 + $0x110] ss:$8 sps:$4 sm:$0xff]   ;;  %v2230_v39 = vld [vmem:[#allocation5 + $0x124] ss:$8 sps:$4 sm:$0xff]   ;;  %v2214_v40 = vld [vmem:[#allocation5 + $0xc0] ss:$8 sps:$4 sm:$0xff]  }
  0x44   :  { %293 = vmatprep.subr.bf16.mxu0 %v2185_v16  ;;  %552 = vmatprep.subr.bf16.mxu1 %v2227_v35  ;;  %v2215_v41 = vld [vmem:[#allocation5 + $0xd4] ss:$8 sps:$4 sm:$0xff]   ;;  %v2232_v42 = vld [vmem:[#allocation5 + $0x120] ss:$8 sps:$4 sm:$0xff]   ;;  %v2217_v43 = vld [vmem:[#allocation5 + $0xd0] ss:$8 sps:$4 sm:$0xff]  }
  0x45   :  { %v2233_v44 = vld [vmem:[#allocation5 + $0x134] ss:$8 sps:$4 sm:$0xff]   ;;  %v2218_v45 = vld [vmem:[#allocation5 + $0xe4] ss:$8 sps:$4 sm:$0xff]   ;;  %v2235_v46 = vld [vmem:[#allocation5 + $0x130] ss:$8 sps:$4 sm:$0xff]  }
  0x46   :  { %v2236_v47 = vld [vmem:[#allocation5 + $0x144] ss:$8 sps:$4 sm:$0xff]   ;;  %v2220_v48 = vld [vmem:[#allocation5 + $0xe0] ss:$8 sps:$4 sm:$0xff]   ;;  %v2221_v49 = vld [vmem:[#allocation5 + $0xf4] ss:$8 sps:$4 sm:$0xff]  }
  0x47   :  { %294 = vmatpush1.bf16.msra.mxu0 %v2187_v17  ;;  %553 = vmatpush1.bf16.msra.mxu1 %v2229_v38  ;;  %v2238_v50 = vld [vmem:[#allocation5 + $0x140] ss:$8 sps:$4 sm:$0xff]   ;;  %v2239_v51 = vld [vmem:[#allocation5 + $0x154] ss:$8 sps:$4 sm:$0xff]   ;;  %v2223_v52 = vld [vmem:[#allocation5 + $0xf0] ss:$8 sps:$4 sm:$0xff]  }
  0x48   :  { %295 = vmatprep.subr.bf16.mxu0 %v2188_v18  ;;  %554 = vmatprep.subr.bf16.mxu1 %v2230_v39  ;;  %v2241_v53 = vld [vmem:[#allocation5 + $0x150] ss:$8 sps:$4 sm:$0xff]   ;;  %v2242_v54 = vld [vmem:[#allocation5 + $0x164] ss:$8 sps:$4 sm:$0xff]   ;;  %v2244_v55 = vld [vmem:[#allocation5 + $0x160] ss:$8 sps:$4 sm:$0xff]  }
  0x49   :  { %v2245_v56 = vld [vmem:[#allocation5 + $0x174] ss:$8 sps:$4 sm:$0xff]   ;;  %v2247_v57 = vld [vmem:[#allocation5 + $0x170] ss:$8 sps:$4 sm:$0xff]   ;;  %v2248_v58 = vld [vmem:[#allocation5 + $0x184] ss:$8 sps:$4 sm:$0xff]  }
  0x4a   :  { %v2250_v59 = vld [vmem:[#allocation5 + $0x180] ss:$8 sps:$4 sm:$0xff]   ;;  %v2251_v60 = vld [vmem:[#allocation5 + $0x194] ss:$8 sps:$4 sm:$0xff]   ;;  %v2253_v61 = vld [vmem:[#allocation5 + $0x190] ss:$8 sps:$4 sm:$0xff]  }
  0x4b   :  { %296 = vmatpush1.bf16.msra.mxu0 %v2190_v19  ;;  %555 = vmatpush1.bf16.msra.mxu1 %v2232_v42  ;;  %v2254_v62 = vld [vmem:[#allocation5 + $0x1a4] ss:$8 sps:$4 sm:$0xff]   ;;  %v2256_v63 = vld [vmem:[#allocation5 + $0x1a0] ss:$8 sps:$4 sm:$0xff]   ;;  %v2257_v3 = vld [vmem:[#allocation5 + $0x1b4] ss:$8 sps:$4 sm:$0xff]  }
  0x4c   :  { %297 = vmatprep.subr.bf16.mxu0 %v2191_v20  ;;  %556 = vmatprep.subr.bf16.mxu1 %v2233_v44  ;;  %v2259_v4 = vld [vmem:[#allocation5 + $0x1b0] ss:$8 sps:$4 sm:$0xff]   ;;  %v2260_v6 = vld [vmem:[#allocation5 + $0x1c4] ss:$8 sps:$4 sm:$0xff]   ;;  %v2262_v7 = vld [vmem:[#allocation5 + $0x1c0] ss:$8 sps:$4 sm:$0xff]  }
  0x4d   :  { %v2284_v33 = vld [vmem:[#allocation5 + $0x240] ss:$8 sps:$4 sm:$0xff]   ;;  %v2289_v34 = vld [vmem:[#allocation5 + $0x254] ss:$8 sps:$4 sm:$0xff]   ;;  %v2287_v35 = vld [vmem:[#allocation5 + $0x250] ss:$8 sps:$4 sm:$0xff]  }
  0x4e   :  { %v2295_v38 = vld [vmem:[#allocation5 + $0x274] ss:$8 sps:$4 sm:$0xff]   ;;  %v2293_v39 = vld [vmem:[#allocation5 + $0x270] ss:$8 sps:$4 sm:$0xff]   ;;  %v2304_v44 = vld [vmem:[#allocation5 + $0x2a4] ss:$8 sps:$4 sm:$0xff]  }
  0x4f   :  { %298 = vmatpush1.bf16.msra.mxu0 %v2193_v21  ;;  %557 = vmatpush1.bf16.msra.mxu1 %v2235_v46  ;;  %v2301_v42 = vld [vmem:[#allocation5 + $0x294] ss:$8 sps:$4 sm:$0xff]   ;;  %s2582_s26 = scalar_lea.vmem %s1930_s25, 512 }
  0x50   :  { %299 = vmatprep.subr.bf16.mxu0 %v2194_v22  ;;  %558 = vmatprep.subr.bf16.mxu1 %v2236_v47  ;;  %v2263_v22 = vld [vmem:[#allocation5 + $0x1d4] ss:$8 sps:$4 sm:$0xff]   ;;  %v2305_v47 = vld [vmem:[#allocation5 + $0x2b0] ss:$8 sps:$4 sm:$0xff]   ;;  %p2583_p10 = scmp.ne.s32.totalorder %s1930_s25, %s2582_s26  ;;  %p2588_p12 = scmp.lt.s32.totalorder %s2582_s26, %s2582_s26 }
  0x51   :  { %v2307_v46 = vld [vmem:[#allocation5 + $0x2b4] ss:$8 sps:$4 sm:$0xff]  }
  0x52   :  { %p2589_p13 = por %p2588_p12, %p2587_p11 }
  0x53   :  { %300 = vmatpush1.bf16.msra.mxu0 %v2196_v23  ;;  %559 = vmatpush1.bf16.msra.mxu1 %v2238_v50  ;;  %v2265_v23 = vld [vmem:[#allocation5 + $0x1d0] ss:$8 sps:$4 sm:$0xff]   ;;  %v117_v50 = vlaneseq }
  0x54   :  { %301 = vmatprep.subr.bf16.mxu0 %v2197_v24  ;;  %560 = vmatprep.subr.bf16.mxu1 %v2239_v51  ;;  %v2266_v24 = vld [vmem:[#allocation5 + $0x1e4] ss:$8 sps:$4 sm:$0xff]   ;;  %p2590_p0 = pnand %p2589_p13, %p2583_p10 }
  0x55   :  { %v118_v51 = vshrl.u32 %v117_v50, 7 }
  0x57   :  { %302 = vmatpush1.bf16.msra.mxu0 %v2199_v25  ;;  %561 = vmatpush1.bf16.msra.mxu1 %v2241_v53  ;;  %v2268_v25 = vld [vmem:[#allocation5 + $0x1e0] ss:$8 sps:$4 sm:$0xff]  }
  0x58   :  { %303 = vmatprep.subr.bf16.mxu0 %v2200_v26  ;;  %562 = vmatprep.subr.bf16.mxu1 %v2242_v54  ;;  %v2269_v26 = vld [vmem:[#allocation5 + $0x1f4] ss:$8 sps:$4 sm:$0xff]   ;;  %v115_v53 = vld [vmem:[#allocation7] sm:$0x3]  ;;  %v2701_v54 = vsub.s32 1, %v118_v51 }
  0x5b   :  { %304 = vmatpush1.bf16.msra.mxu0 %v2202_v27  ;;  %563 = vmatpush1.bf16.msra.mxu1 %v2244_v55  ;;  %v2277_v27 = vld [vmem:[#allocation5 + $0x214] ss:$8 sps:$4 sm:$0xff]  }
  0x5c   :  { %305 = vmatprep.subr.bf16.mxu0 %v2203_v28  ;;  %564 = vmatprep.subr.bf16.mxu1 %v2245_v56  ;;  %v2280_v28 = vld [vmem:[#allocation5 + $0x224] ss:$8 sps:$4 sm:$0xff]   ;;  %v124_v56 = vrot.slane %v115_v53, %v2701_v54 }
  0x5f   :  { %306 = vmatpush1.bf16.msra.mxu0 %v2205_v29  ;;  %565 = vmatpush1.bf16.msra.mxu1 %v2247_v57  ;;  %v2278_v29 = vld [vmem:[#allocation5 + $0x220] ss:$8 sps:$4 sm:$0xff]  }
  0x60   :  { %307 = vmatprep.subr.bf16.mxu0 %v2206_v30  ;;  %566 = vmatprep.subr.bf16.mxu1 %v2248_v58  ;;  %v2283_v30 = vld [vmem:[#allocation5 + $0x234] ss:$8 sps:$4 sm:$0xff]  }
  0x63   :  { %308 = vmatpush1.bf16.msra.mxu0 %v2208_v31  ;;  %567 = vmatpush1.bf16.msra.mxu1 %v2250_v59  ;;  %v2281_v31 = vld [vmem:[#allocation5 + $0x230] ss:$8 sps:$4 sm:$0xff]  }
  0x64   :  { %309 = vmatprep.subr.bf16.mxu0 %v2209_v32  ;;  %568 = vmatprep.subr.bf16.mxu1 %v2251_v60  ;;  %v2286_v32 = vld [vmem:[#allocation5 + $0x244] ss:$8 sps:$4 sm:$0xff]  }
  0x67   :  { %310 = vmatpush1.bf16.msra.mxu0 %v2211_v36  ;;  %569 = vmatpush1.bf16.msra.mxu1 %v2253_v61  ;;  %v2292_v36 = vld [vmem:[#allocation5 + $0x264] ss:$8 sps:$4 sm:$0xff]  }
  0x68   :  { %311 = vmatprep.subr.bf16.mxu0 %v2212_v37  ;;  %570 = vmatprep.subr.bf16.mxu1 %v2254_v62  ;;  %v2290_v37 = vld [vmem:[#allocation5 + $0x260] ss:$8 sps:$4 sm:$0xff]  }
  0x6b   :  { %312 = vmatpush1.bf16.msra.mxu0 %v2214_v40  ;;  %571 = vmatpush1.bf16.msra.mxu1 %v2256_v63  ;;  %v2298_v40 = vld [vmem:[#allocation5 + $0x284] ss:$8 sps:$4 sm:$0xff]  }
  0x6c   :  { %313 = vmatprep.subr.bf16.mxu0 %v2215_v41  ;;  %572 = vmatprep.subr.bf16.mxu1 %v2257_v3  ;;  %v2296_v41 = vld [vmem:[#allocation5 + $0x280] ss:$8 sps:$4 sm:$0xff]  }
  0x6f   :  { %314 = vmatpush1.bf16.msra.mxu0 %v2217_v43  ;;  %573 = vmatpush1.bf16.msra.mxu1 %v2259_v4  ;;  %v2299_v43 = vld [vmem:[#allocation5 + $0x290] ss:$8 sps:$4 sm:$0xff]  }
  0x70   :  { %315 = vmatprep.subr.bf16.mxu0 %v2218_v45  ;;  %574 = vmatprep.subr.bf16.mxu1 %v2260_v6  ;;  %v2302_v45 = vld [vmem:[#allocation5 + $0x2a0] ss:$8 sps:$4 sm:$0xff]  }
  0x73   :  { %316 = vmatpush1.bf16.msra.mxu0 %v2220_v48  ;;  %575 = vmatpush1.bf16.msra.mxu1 %v2262_v7  ;;  %v2310_v48 = vld [vmem:[#allocation5 + $0x2c4] ss:$8 sps:$4 sm:$0xff]  }
  0x74   :  { %317 = vmatprep.subr.bf16.mxu0 %v2221_v49  ;;  %576 = vmatprep.subr.bf16.mxu1 %v2263_v22  ;;  %v2308_v49 = vld [vmem:[#allocation5 + $0x2c0] ss:$8 sps:$4 sm:$0xff]   ;;  %v2322_v22 = vld [vmem:[#allocation5 + $0x304] ss:$8 sps:$4 sm:$0xff]  }
  0x77   :  { %318 = vmatpush1.bf16.msra.mxu0 %v2223_v52  ;;  %577 = vmatpush1.bf16.msra.mxu1 %v2265_v23  ;;  %v2699_v52 = vsub.s32 0, %v118_v51  ;;  %v2325_v23 = vld [vmem:[#allocation5 + $0x314] ss:$8 sps:$4 sm:$0xff]  }
  0x78   :  { %578 = vmatprep.subr.bf16.mxu1 %v2266_v24  ;;  %v2323_v24 = vld [vmem:[#allocation5 + $0x310] ss:$8 sps:$4 sm:$0xff]  }
  0x79   :  { %v120_v55 = vrot.slane %v115_v53, %v2699_v52 }
  0x7b   :  { %579 = vmatpush1.bf16.msra.mxu1 %v2268_v25  ;;  %v2328_v25 = vld [vmem:[#allocation5 + $0x324] ss:$8 sps:$4 sm:$0xff]  }
  0x7c   :  { %580 = vmatprep.subr.bf16.mxu1 %v2269_v26  ;;  %v2326_v26 = vld [vmem:[#allocation5 + $0x320] ss:$8 sps:$4 sm:$0xff]  }
  0xca   :  { %v66_v8 = vpop.xlane.xlu0 %65 }
  0xcb   :  { %v71_v9 = vmul.f32 0.00390625, %v66_v8 }
  0xcd   :  { %v73_v10 = vadd.f32 1e-08, %v71_v9 }
  0xce   :  { %v69_v11 = vpop.xlane.xlu0 %68 }
  0xcf   :  { %v72_v12 = vmul.f32 0.00390625, %v69_v11  ;;  %2512 = vrsqrt.f32 %v73_v10 }
  0xd1   :  { %v74_v13 = vadd.f32 1e-08, %v72_v12 }
  0xd3   :  { %2514 = vrsqrt.f32 %v74_v13 }
  0xd9   :  { %v2513_v14 = vpop.eup %2512 }
  0xda   :  { %v78_v16 = vmul.f32 %v2513_v14, %v2681_v1  ;;  %v77_v18 = vmul.f32 %v2513_v14, %v2679_v0  ;;  %v2271_v1 = vld [vmem:[#allocation5 + $0x1f0] ss:$8 sps:$4 sm:$0xff]   ;;  %v2274_v0 = vld [vmem:[#allocation5 + $0x204] ss:$8 sps:$4 sm:$0xff]  }
  0xdb   :  { %581 = vmatpush1.bf16.msra.mxu1 %v2271_v1  ;;  %813 = vmatprep.subr.bf16.mxu0 %v2274_v0  ;;  %v2331_v1 = vld [vmem:[#allocation5 + $0x334] ss:$8 sps:$4 sm:$0xff]   ;;  %v2334_v0 = vld [vmem:[#allocation5 + $0x344] ss:$8 sps:$4 sm:$0xff]  }
  0xdc   :  { %1076 = vmatprep.subr.bf16.mxu1 %v2322_v22  ;;  %v2385_v22 = vld [vmem:[#allocation5 + $0x454] ss:$8 sps:$4 sm:$0xff]  }
  0xdd   :  { %v2515_v15 = vpop.eup %2514 }
  0xde   :  { %v80_v17 = vmul.f32 %v2515_v15, %v2689_v5  ;;  %v79_v19 = vmul.f32 %v2515_v15, %v2683_v2  ;;  %v2272_v5 = vld [vmem:[#allocation5 + $0x200] ss:$8 sps:$4 sm:$0xff]   ;;  %v2275_v2 = vld [vmem:[#allocation5 + $0x210] ss:$8 sps:$4 sm:$0xff]   ;;  %v2313_v15 = vld [vmem:[#allocation5 + $0x2d4] ss:$8 sps:$4 sm:$0xff]  }
  0xe0   :  { %v82_v20 = vpack.c.bf16 %v80_v17, %v78_v16  ;;  %v81_v21 = vpack.c.bf16 %v79_v19, %v77_v18  ;;  %v2311_v16 = vld [vmem:[#allocation5 + $0x2d0] ss:$8 sps:$4 sm:$0xff]   ;;  %v2316_v17 = vld [vmem:[#allocation5 + $0x2e4] ss:$8 sps:$4 sm:$0xff]   ;;  %v2314_v18 = vld [vmem:[#allocation5 + $0x2e0] ss:$8 sps:$4 sm:$0xff]  }
  0xe1   :  { %v2319_v19 = vld [vmem:[#allocation5 + $0x2f4] ss:$8 sps:$4 sm:$0xff]  }
  0xe2   :  { %319 = vmatprep.mubr.bf16.mxu0 %v82_v20  ;;  %v2317_v20 = vld [vmem:[#allocation5 + $0x2f0] ss:$8 sps:$4 sm:$0xff]  }
  0xe3   :  { %320 = vmatmul.mubr.bf16.vlgmr.msra.gmra.mrb[0].mxu0 %v81_v21  ;;  %v2320_v21 = vld [vmem:[#allocation5 + $0x300] ss:$8 sps:$4 sm:$0xff]  }
  0xe4   :  { %814 = vmatpush1.bf16.msra.mxu0 %v2272_v5  ;;  %v2329_v5 = vld [vmem:[#allocation5 + $0x330] ss:$8 sps:$4 sm:$0xff]  }
  0xe5   :  { %815 = vmatprep.subr.bf16.mxu0 %v2277_v27  ;;  %v2332_v27 = vld [vmem:[#allocation5 + $0x340] ss:$8 sps:$4 sm:$0xff]  }
  0xe8   :  { %816 = vmatpush1.bf16.msra.mxu0 %v2275_v2  ;;  %v2337_v2 = vld [vmem:[#allocation5 + $0x354] ss:$8 sps:$4 sm:$0xff]  }
  0xe9   :  { %817 = vmatprep.subr.bf16.mxu0 %v2280_v28  ;;  %v2335_v28 = vld [vmem:[#allocation5 + $0x350] ss:$8 sps:$4 sm:$0xff]  }
  0xec   :  { %818 = vmatpush1.bf16.msra.mxu0 %v2278_v29  ;;  %v2340_v29 = vld [vmem:[#allocation5 + $0x364] ss:$8 sps:$4 sm:$0xff]  }
  0xed   :  { %819 = vmatprep.subr.bf16.mxu0 %v2283_v30  ;;  %v2338_v30 = vld [vmem:[#allocation5 + $0x360] ss:$8 sps:$4 sm:$0xff]  }
  0xf0   :  { %820 = vmatpush1.bf16.msra.mxu0 %v2281_v31  ;;  %v2343_v31 = vld [vmem:[#allocation5 + $0x374] ss:$8 sps:$4 sm:$0xff]  }
  0xf1   :  { %821 = vmatprep.subr.bf16.mxu0 %v2286_v32  ;;  %v2341_v32 = vld [vmem:[#allocation5 + $0x370] ss:$8 sps:$4 sm:$0xff]  }
  0xf4   :  { %822 = vmatpush1.bf16.msra.mxu0 %v2284_v33  ;;  %v2346_v33 = vld [vmem:[#allocation5 + $0x384] ss:$8 sps:$4 sm:$0xff]  }
  0xf5   :  { %823 = vmatprep.subr.bf16.mxu0 %v2289_v34  ;;  %v2344_v34 = vld [vmem:[#allocation5 + $0x380] ss:$8 sps:$4 sm:$0xff]  }
  0xf8   :  { %824 = vmatpush1.bf16.msra.mxu0 %v2287_v35  ;;  %v2349_v35 = vld [vmem:[#allocation5 + $0x394] ss:$8 sps:$4 sm:$0xff]  }
  0xf9   :  { %825 = vmatprep.subr.bf16.mxu0 %v2292_v36  ;;  %v2347_v36 = vld [vmem:[#allocation5 + $0x390] ss:$8 sps:$4 sm:$0xff]  }
  0xfc   :  { %826 = vmatpush1.bf16.msra.mxu0 %v2290_v37  ;;  %v2352_v37 = vld [vmem:[#allocation5 + $0x3a4] ss:$8 sps:$4 sm:$0xff]  }
  0xfd   :  { %827 = vmatprep.subr.bf16.mxu0 %v2295_v38  ;;  %v2350_v38 = vld [vmem:[#allocation5 + $0x3a0] ss:$8 sps:$4 sm:$0xff]  }
 0x100   :  { %828 = vmatpush1.bf16.msra.mxu0 %v2293_v39  ;;  %v2355_v39 = vld [vmem:[#allocation5 + $0x3b4] ss:$8 sps:$4 sm:$0xff]  }
 0x101   :  { %829 = vmatprep.subr.bf16.mxu0 %v2298_v40  ;;  %v2353_v40 = vld [vmem:[#allocation5 + $0x3b0] ss:$8 sps:$4 sm:$0xff]  }
 0x104   :  { %830 = vmatpush1.bf16.msra.mxu0 %v2296_v41  ;;  %v2358_v41 = vld [vmem:[#allocation5 + $0x3c4] ss:$8 sps:$4 sm:$0xff]  }
 0x105   :  { %831 = vmatprep.subr.bf16.mxu0 %v2301_v42  ;;  %v2356_v42 = vld [vmem:[#allocation5 + $0x3c0] ss:$8 sps:$4 sm:$0xff]  }
 0x108   :  { %832 = vmatpush1.bf16.msra.mxu0 %v2299_v43  ;;  %v378_v43 = vld [vmem:[#allocation7 + $0x2] sm:$0x3] }
 0x109   :  { %833 = vmatprep.subr.bf16.mxu0 %v2304_v44  ;;  %v383_v44 = vrot.slane %v378_v43, %v2699_v52 }
 0x10c   :  { %834 = vmatpush1.bf16.msra.mxu0 %v2302_v45  ;;  %v387_v45 = vrot.slane %v378_v43, %v2701_v54 }
 0x10d   :  { %835 = vmatprep.subr.bf16.mxu0 %v2307_v46 }
 0x110   :  { %836 = vmatpush1.bf16.msra.mxu0 %v2305_v47 }
 0x111   :  { %837 = vmatprep.subr.bf16.mxu0 %v2310_v48 }
 0x114   :  { %838 = vmatpush1.bf16.msra.mxu0 %v2308_v49 }
 0x115   :  { %839 = vmatprep.subr.bf16.mxu0 %v2313_v15  ;;  %v2371_v15 = vld [vmem:[#allocation5 + $0x410] ss:$8 sps:$4 sm:$0xff]  }
 0x118   :  { %840 = vmatpush1.bf16.msra.mxu0 %v2311_v16  ;;  %v2376_v16 = vld [vmem:[#allocation5 + $0x424] ss:$8 sps:$4 sm:$0xff]  }
 0x119   :  { %841 = vmatprep.subr.bf16.mxu0 %v2316_v17  ;;  %v2374_v17 = vld [vmem:[#allocation5 + $0x420] ss:$8 sps:$4 sm:$0xff]  }
 0x11c   :  { %842 = vmatpush1.bf16.msra.mxu0 %v2314_v18  ;;  %v2379_v18 = vld [vmem:[#allocation5 + $0x434] ss:$8 sps:$4 sm:$0xff]  }
 0x11d   :  { %843 = vmatprep.subr.bf16.mxu0 %v2319_v19  ;;  %v2377_v19 = vld [vmem:[#allocation5 + $0x430] ss:$8 sps:$4 sm:$0xff]  }
 0x120   :  { %844 = vmatpush1.bf16.msra.mxu0 %v2317_v20  ;;  %v2382_v20 = vld [vmem:[#allocation5 + $0x444] ss:$8 sps:$4 sm:$0xff]  }
 0x1b6   :  { %v321_v57 = vpop.f32.mrb[0].mxu0 }
 0x1b7   :  { %v322_v58 = vadd.f32 %v321_v57, %v120_v55  ;;  %v323_v59 = vpop.f32.mrb[1].mxu0 }
 0x1b8   :  { %v324_v60 = vadd.f32 %v323_v59, %v124_v56  ;;  %v325_v61 = vpop.f32.mrb[2].mxu0 }
 0x1b9   :  { %v334_v62 = vmul.f32 0.2, %v322_v58  ;;  %v326_v63 = vadd.f32 %v325_v61, %v120_v55  ;;  %v327_v3 = vpop.f32.mrb[3].mxu0  ;;  %vm330_vm0 = vcmp.gt.f32.partialorder %v322_v58, 0.0 }
 0x1ba   :  { %v335_v4 = vmul.f32 0.2, %v324_v60  ;;  %v328_v6 = vadd.f32 %v327_v3, %v124_v56  ;;  %vm331_vm2 = vcmp.gt.f32.partialorder %v324_v60, 0.0 }
 0x1bb   :  { %vm332_vm1 = vcmp.gt.f32.partialorder %v326_v63, 0.0  ;;  %v336_v7 = vmul.f32 0.2, %v326_v63  ;;  %v338_v9 = vsel %vm330_vm0, %v322_v58, %v334_v62 }
 0x1bc   :  { %v337_v8 = vmul.f32 0.2, %v328_v6  ;;  %vm333_vm3 = vcmp.gt.f32.partialorder %v328_v6, 0.0  ;;  %v339_v11 = vsel %vm331_vm2, %v324_v60, %v335_v4 }
 0x1bd   :  { %v340_v10 = vsel %vm332_vm1, %v326_v63, %v336_v7  ;;  %v2359_v7 = vld [vmem:[#allocation5 + $0x3d0] ss:$8 sps:$4 sm:$0xff]  }
 0x1be   :  { %v341_v12 = vsel %vm333_vm3, %v328_v6, %v337_v8  ;;  %v342_v13 = vpack.c.bf16 %v340_v10, %v338_v9  ;;  %v2361_v6 = vld [vmem:[#allocation5 + $0x3d4] ss:$8 sps:$4 sm:$0xff]   ;;  %v2364_v8 = vld [vmem:[#allocation5 + $0x3e4] ss:$8 sps:$4 sm:$0xff]   ;;  %v2362_v9 = vld [vmem:[#allocation5 + $0x3e0] ss:$8 sps:$4 sm:$0xff]  }
 0x1bf   :  { %v343_v14 = vpack.c.bf16 %v341_v12, %v339_v11  ;;  %v2367_v10 = vld [vmem:[#allocation5 + $0x3f4] ss:$8 sps:$4 sm:$0xff]   ;;  %v2365_v11 = vld [vmem:[#allocation5 + $0x3f0] ss:$8 sps:$4 sm:$0xff]   ;;  %v2368_v12 = vld [vmem:[#allocation5 + $0x400] ss:$8 sps:$4 sm:$0xff]  }
 0x1c1   :  { %582 = vmatprep.mubr.bf16.mxu1 %v343_v14  ;;  %v2373_v14 = vld [vmem:[#allocation5 + $0x414] ss:$8 sps:$4 sm:$0xff]  }
 0x1c2   :  { %583 = vmatmul.mubr.bf16.vlgmr.msra.gmra.mrb[0].mxu1 %v342_v13  ;;  %v2370_v13 = vld [vmem:[#allocation5 + $0x404] ss:$8 sps:$4 sm:$0xff]  }
 0x1c3   :  { %1077 = vmatpush1.bf16.msra.mxu1 %v2320_v21  ;;  %1339 = vmatprep.subr.bf16.mxu0 %v2370_v13  ;;  %v2380_v21 = vld [vmem:[#allocation5 + $0x440] ss:$8 sps:$4 sm:$0xff]   ;;  %v2433_v13 = vld [vmem:[#allocation5 + $0x554] ss:$8 sps:$4 sm:$0xff]  }
 0x1c4   :  { %1078 = vmatprep.subr.bf16.mxu1 %v2325_v23  ;;  %v2383_v23 = vld [vmem:[#allocation5 + $0x450] ss:$8 sps:$4 sm:$0xff]  }
 0x1c7   :  { %1079 = vmatpush1.bf16.msra.mxu1 %v2323_v24  ;;  %v2388_v24 = vld [vmem:[#allocation5 + $0x464] ss:$8 sps:$4 sm:$0xff]  }
 0x1c8   :  { %1080 = vmatprep.subr.bf16.mxu1 %v2328_v25  ;;  %v2386_v25 = vld [vmem:[#allocation5 + $0x460] ss:$8 sps:$4 sm:$0xff]  }
 0x1cb   :  { %1081 = vmatpush1.bf16.msra.mxu1 %v2326_v26  ;;  %v2391_v26 = vld [vmem:[#allocation5 + $0x474] ss:$8 sps:$4 sm:$0xff]  }
 0x1cc   :  { %1082 = vmatprep.subr.bf16.mxu1 %v2331_v1  ;;  %v2389_v1 = vld [vmem:[#allocation5 + $0x470] ss:$8 sps:$4 sm:$0xff]  }
 0x1cf   :  { %1083 = vmatpush1.bf16.msra.mxu1 %v2329_v5  ;;  %v2394_v5 = vld [vmem:[#allocation5 + $0x484] ss:$8 sps:$4 sm:$0xff]  }
 0x1d0   :  { %1084 = vmatprep.subr.bf16.mxu1 %v2334_v0  ;;  %v2392_v0 = vld [vmem:[#allocation5 + $0x480] ss:$8 sps:$4 sm:$0xff]  }
 0x1d3   :  { %1085 = vmatpush1.bf16.msra.mxu1 %v2332_v27  ;;  %v2397_v27 = vld [vmem:[#allocation5 + $0x494] ss:$8 sps:$4 sm:$0xff]  }
 0x1d4   :  { %1086 = vmatprep.subr.bf16.mxu1 %v2337_v2  ;;  %v2395_v2 = vld [vmem:[#allocation5 + $0x490] ss:$8 sps:$4 sm:$0xff]  }
 0x1d7   :  { %1087 = vmatpush1.bf16.msra.mxu1 %v2335_v28  ;;  %v2400_v28 = vld [vmem:[#allocation5 + $0x4a4] ss:$8 sps:$4 sm:$0xff]  }
 0x1d8   :  { %1088 = vmatprep.subr.bf16.mxu1 %v2340_v29  ;;  %v2398_v29 = vld [vmem:[#allocation5 + $0x4a0] ss:$8 sps:$4 sm:$0xff]  }
 0x1db   :  { %1089 = vmatpush1.bf16.msra.mxu1 %v2338_v30  ;;  %v2403_v30 = vld [vmem:[#allocation5 + $0x4b4] ss:$8 sps:$4 sm:$0xff]  }
 0x1dc   :  { %1090 = vmatprep.subr.bf16.mxu1 %v2343_v31  ;;  %v2401_v31 = vld [vmem:[#allocation5 + $0x4b0] ss:$8 sps:$4 sm:$0xff]  }
 0x1df   :  { %1091 = vmatpush1.bf16.msra.mxu1 %v2341_v32  ;;  %v2406_v32 = vld [vmem:[#allocation5 + $0x4c4] ss:$8 sps:$4 sm:$0xff]  }
 0x1e0   :  { %1092 = vmatprep.subr.bf16.mxu1 %v2346_v33  ;;  %v2404_v33 = vld [vmem:[#allocation5 + $0x4c0] ss:$8 sps:$4 sm:$0xff]  }
 0x1e3   :  { %1093 = vmatpush1.bf16.msra.mxu1 %v2344_v34  ;;  %v641_v34 = vld [vmem:[#allocation7 + $0x4] sm:$0x3] }
 0x1e4   :  { %1094 = vmatprep.subr.bf16.mxu1 %v2349_v35  ;;  %v646_v35 = vrot.slane %v641_v34, %v2699_v52 }
 0x1e7   :  { %1095 = vmatpush1.bf16.msra.mxu1 %v2347_v36  ;;  %v650_v36 = vrot.slane %v641_v34, %v2701_v54 }
 0x1e8   :  { %1096 = vmatprep.subr.bf16.mxu1 %v2352_v37 }
 0x1eb   :  { %1097 = vmatpush1.bf16.msra.mxu1 %v2350_v38 }
 0x1ec   :  { %1098 = vmatprep.subr.bf16.mxu1 %v2355_v39 }
 0x1ef   :  { %1099 = vmatpush1.bf16.msra.mxu1 %v2353_v40 }
 0x1f0   :  { %1100 = vmatprep.subr.bf16.mxu1 %v2358_v41 }
 0x1f3   :  { %1101 = vmatpush1.bf16.msra.mxu1 %v2356_v42 }
 0x1f4   :  { %1102 = vmatprep.subr.bf16.mxu1 %v2361_v6  ;;  %v2419_v6 = vld [vmem:[#allocation5 + $0x510] ss:$8 sps:$4 sm:$0xff]  }
 0x1f7   :  { %1103 = vmatpush1.bf16.msra.mxu1 %v2359_v7  ;;  %v2424_v7 = vld [vmem:[#allocation5 + $0x524] ss:$8 sps:$4 sm:$0xff]  }
 0x1f8   :  { %1104 = vmatprep.subr.bf16.mxu1 %v2364_v8  ;;  %v2422_v8 = vld [vmem:[#allocation5 + $0x520] ss:$8 sps:$4 sm:$0xff]  }
 0x1fb   :  { %1105 = vmatpush1.bf16.msra.mxu1 %v2362_v9  ;;  %v2427_v9 = vld [vmem:[#allocation5 + $0x534] ss:$8 sps:$4 sm:$0xff]  }
 0x1fc   :  { %1106 = vmatprep.subr.bf16.mxu1 %v2367_v10  ;;  %v2425_v10 = vld [vmem:[#allocation5 + $0x530] ss:$8 sps:$4 sm:$0xff]  }
 0x1ff   :  { %1107 = vmatpush1.bf16.msra.mxu1 %v2365_v11  ;;  %v2430_v11 = vld [vmem:[#allocation5 + $0x544] ss:$8 sps:$4 sm:$0xff]  }
 0x295   :  { %v584_v46 = vpop.f32.mrb[0].mxu1 }
 0x296   :  { %v585_v47 = vadd.f32 %v584_v46, %v383_v44  ;;  %v586_v48 = vpop.f32.mrb[1].mxu1 }
 0x297   :  { %v587_v49 = vadd.f32 %v586_v48, %v387_v45  ;;  %v588_v50 = vpop.f32.mrb[2].mxu1 }
 0x298   :  { %v597_v51 = vmul.f32 0.2, %v585_v47  ;;  %v589_v53 = vadd.f32 %v588_v50, %v383_v44  ;;  %v590_v55 = vpop.f32.mrb[3].mxu1  ;;  %vm593_vm4 = vcmp.gt.f32.partialorder %v585_v47, 0.0 }
 0x299   :  { %v598_v56 = vmul.f32 0.2, %v587_v49  ;;  %v591_v57 = vadd.f32 %v590_v55, %v387_v45  ;;  %vm594_vm5 = vcmp.gt.f32.partialorder %v587_v49, 0.0 }
 0x29a   :  { %vm595_vm6 = vcmp.gt.f32.partialorder %v589_v53, 0.0  ;;  %v599_v58 = vmul.f32 0.2, %v589_v53  ;;  %v601_v60 = vsel %vm593_vm4, %v585_v47, %v597_v51 }
 0x29b   :  { %vm596_vm7 = vcmp.gt.f32.partialorder %v591_v57, 0.0  ;;  %v600_v59 = vmul.f32 0.2, %v591_v57  ;;  %v602_v63 = vsel %vm594_vm5, %v587_v49, %v598_v56 }
 0x29c   :  { %v603_v61 = vsel %vm595_vm6, %v589_v53, %v599_v58  ;;  %v2407_v58 = vld [vmem:[#allocation5 + $0x4d0] ss:$8 sps:$4 sm:$0xff]  }
 0x29d   :  { %v605_v62 = vpack.c.bf16 %v603_v61, %v601_v60  ;;  %v604_v3 = vsel %vm596_vm7, %v591_v57, %v600_v59  ;;  %v2409_v57 = vld [vmem:[#allocation5 + $0x4d4] ss:$8 sps:$4 sm:$0xff]   ;;  %v2412_v59 = vld [vmem:[#allocation5 + $0x4e4] ss:$8 sps:$4 sm:$0xff]   ;;  %v2410_v60 = vld [vmem:[#allocation5 + $0x4e0] ss:$8 sps:$4 sm:$0xff]  }
 0x29e   :  { %v606_v4 = vpack.c.bf16 %v604_v3, %v602_v63  ;;  %v2415_v61 = vld [vmem:[#allocation5 + $0x4f4] ss:$8 sps:$4 sm:$0xff]   ;;  %v2416_v63 = vld [vmem:[#allocation5 + $0x500] ss:$8 sps:$4 sm:$0xff]   ;;  %v2418_v3 = vld [vmem:[#allocation5 + $0x504] ss:$8 sps:$4 sm:$0xff]  }
 0x29f   :  { %1602 = vmatprep.subr.bf16.mxu1 %v2418_v3  ;;  %v2481_v3 = vld [vmem:[#allocation5 + $0x654] ss:$8 sps:$4 sm:$0xff]  }
 0x2a0   :  { %845 = vmatprep.mubr.bf16.mxu0 %v606_v4  ;;  %v2421_v4 = vld [vmem:[#allocation5 + $0x514] ss:$8 sps:$4 sm:$0xff]  }
 0x2a1   :  { %846 = vmatmul.mubr.bf16.vlgmr.msra.gmra.mrb[4].mxu0 %v605_v62  ;;  %v2413_v62 = vld [vmem:[#allocation5 + $0x4f0] ss:$8 sps:$4 sm:$0xff]  }
 0x2a2   :  { %1340 = vmatpush1.bf16.msra.mxu0 %v2368_v12  ;;  %v2428_v12 = vld [vmem:[#allocation5 + $0x540] ss:$8 sps:$4 sm:$0xff]  }
 0x2a3   :  { %1341 = vmatprep.subr.bf16.mxu0 %v2373_v14  ;;  %v2431_v14 = vld [vmem:[#allocation5 + $0x550] ss:$8 sps:$4 sm:$0xff]  }
 0x2a6   :  { %1342 = vmatpush1.bf16.msra.mxu0 %v2371_v15  ;;  %v2436_v15 = vld [vmem:[#allocation5 + $0x564] ss:$8 sps:$4 sm:$0xff]  }
 0x2a7   :  { %1343 = vmatprep.subr.bf16.mxu0 %v2376_v16  ;;  %v2434_v16 = vld [vmem:[#allocation5 + $0x560] ss:$8 sps:$4 sm:$0xff]  }
 0x2aa   :  { %1344 = vmatpush1.bf16.msra.mxu0 %v2374_v17  ;;  %v2439_v17 = vld [vmem:[#allocation5 + $0x574] ss:$8 sps:$4 sm:$0xff]  }
 0x2ab   :  { %1345 = vmatprep.subr.bf16.mxu0 %v2379_v18  ;;  %v2437_v18 = vld [vmem:[#allocation5 + $0x570] ss:$8 sps:$4 sm:$0xff]  }
 0x2ae   :  { %1346 = vmatpush1.bf16.msra.mxu0 %v2377_v19  ;;  %v2442_v19 = vld [vmem:[#allocation5 + $0x584] ss:$8 sps:$4 sm:$0xff]  }
 0x2af   :  { %1347 = vmatprep.subr.bf16.mxu0 %v2382_v20  ;;  %v2440_v20 = vld [vmem:[#allocation5 + $0x580] ss:$8 sps:$4 sm:$0xff]  }
 0x2b2   :  { %1348 = vmatpush1.bf16.msra.mxu0 %v2380_v21  ;;  %v2445_v21 = vld [vmem:[#allocation5 + $0x594] ss:$8 sps:$4 sm:$0xff]  }
 0x2b3   :  { %1349 = vmatprep.subr.bf16.mxu0 %v2385_v22  ;;  %v2443_v22 = vld [vmem:[#allocation5 + $0x590] ss:$8 sps:$4 sm:$0xff]  }
 0x2b6   :  { %1350 = vmatpush1.bf16.msra.mxu0 %v2383_v23  ;;  %v2448_v23 = vld [vmem:[#allocation5 + $0x5a4] ss:$8 sps:$4 sm:$0xff]  }
 0x2b7   :  { %1351 = vmatprep.subr.bf16.mxu0 %v2388_v24  ;;  %v2446_v24 = vld [vmem:[#allocation5 + $0x5a0] ss:$8 sps:$4 sm:$0xff]  }
 0x2ba   :  { %1352 = vmatpush1.bf16.msra.mxu0 %v2386_v25  ;;  %v2451_v25 = vld [vmem:[#allocation5 + $0x5b4] ss:$8 sps:$4 sm:$0xff]  }
 0x2bb   :  { %1353 = vmatprep.subr.bf16.mxu0 %v2391_v26  ;;  %v2449_v26 = vld [vmem:[#allocation5 + $0x5b0] ss:$8 sps:$4 sm:$0xff]  }
 0x2be   :  { %1354 = vmatpush1.bf16.msra.mxu0 %v2389_v1  ;;  %v2454_v1 = vld [vmem:[#allocation5 + $0x5c4] ss:$8 sps:$4 sm:$0xff]  }
 0x2bf   :  { %1355 = vmatprep.subr.bf16.mxu0 %v2394_v5  ;;  %v2452_v5 = vld [vmem:[#allocation5 + $0x5c0] ss:$8 sps:$4 sm:$0xff]  }
 0x2c2   :  { %1356 = vmatpush1.bf16.msra.mxu0 %v2392_v0  ;;  %v904_v0 = vld [vmem:[#allocation7 + $0x6] sm:$0x3] }
 0x2c3   :  { %1357 = vmatprep.subr.bf16.mxu0 %v2397_v27  ;;  %v909_v27 = vrot.slane %v904_v0, %v2699_v52 }
 0x2c6   :  { %1358 = vmatpush1.bf16.msra.mxu0 %v2395_v2  ;;  %v913_v2 = vrot.slane %v904_v0, %v2701_v54 }
 0x2c7   :  { %1359 = vmatprep.subr.bf16.mxu0 %v2400_v28 }
 0x2ca   :  { %1360 = vmatpush1.bf16.msra.mxu0 %v2398_v29 }
 0x2cb   :  { %1361 = vmatprep.subr.bf16.mxu0 %v2403_v30 }
 0x2ce   :  { %1362 = vmatpush1.bf16.msra.mxu0 %v2401_v31 }
 0x2cf   :  { %1363 = vmatprep.subr.bf16.mxu0 %v2406_v32 }
 0x2d2   :  { %1364 = vmatpush1.bf16.msra.mxu0 %v2404_v33 }
 0x2d3   :  { %1365 = vmatprep.subr.bf16.mxu0 %v2409_v57  ;;  %v2467_v57 = vld [vmem:[#allocation5 + $0x610] ss:$8 sps:$4 sm:$0xff]  }
 0x2d6   :  { %1366 = vmatpush1.bf16.msra.mxu0 %v2407_v58  ;;  %v2472_v58 = vld [vmem:[#allocation5 + $0x624] ss:$8 sps:$4 sm:$0xff]  }
 0x2d7   :  { %1367 = vmatprep.subr.bf16.mxu0 %v2412_v59  ;;  %v2470_v59 = vld [vmem:[#allocation5 + $0x620] ss:$8 sps:$4 sm:$0xff]  }
 0x2da   :  { %1368 = vmatpush1.bf16.msra.mxu0 %v2410_v60  ;;  %v2475_v60 = vld [vmem:[#allocation5 + $0x634] ss:$8 sps:$4 sm:$0xff]  }
 0x2db   :  { %1369 = vmatprep.subr.bf16.mxu0 %v2415_v61  ;;  %v2473_v61 = vld [vmem:[#allocation5 + $0x630] ss:$8 sps:$4 sm:$0xff]  }
 0x2de   :  { %1370 = vmatpush1.bf16.msra.mxu0 %v2413_v62  ;;  %v2478_v62 = vld [vmem:[#allocation5 + $0x644] ss:$8 sps:$4 sm:$0xff]  }
 0x374   :  { %v847_v37 = vpop.f32.mrb[4].mxu0 }
 0x375   :  { %v848_v38 = vadd.f32 %v847_v37, %v646_v35  ;;  %v849_v39 = vpop.f32.mrb[5].mxu0 }
 0x376   :  { %v850_v40 = vadd.f32 %v849_v39, %v650_v36  ;;  %v851_v41 = vpop.f32.mrb[6].mxu0 }
 0x377   :  { %v860_v42 = vmul.f32 0.2, %v848_v38  ;;  %v852_v43 = vadd.f32 %v851_v41, %v646_v35  ;;  %v853_v44 = vpop.f32.mrb[7].mxu0  ;;  %vm856_vm8 = vcmp.gt.f32.partialorder %v848_v38, 0.0 }
 0x378   :  { %v861_v45 = vmul.f32 0.2, %v850_v40  ;;  %v854_v46 = vadd.f32 %v853_v44, %v650_v36  ;;  %vm857_vm9 = vcmp.gt.f32.partialorder %v850_v40, 0.0 }
 0x379   :  { %vm858_vm10 = vcmp.gt.f32.partialorder %v852_v43, 0.0  ;;  %v862_v47 = vmul.f32 0.2, %v852_v43  ;;  %v864_v49 = vsel %vm856_vm8, %v848_v38, %v860_v42 }
 0x37a   :  { %vm859_vm11 = vcmp.gt.f32.partialorder %v854_v46, 0.0  ;;  %v863_v48 = vmul.f32 0.2, %v854_v46  ;;  %v865_v53 = vsel %vm857_vm9, %v850_v40, %v861_v45 }
 0x37b   :  { %v866_v50 = vsel %vm858_vm10, %v852_v43, %v862_v47  ;;  %v2455_v47 = vld [vmem:[#allocation5 + $0x5d0] ss:$8 sps:$4 sm:$0xff]  }
 0x37c   :  { %v868_v51 = vpack.c.bf16 %v866_v50, %v864_v49  ;;  %v867_v55 = vsel %vm859_vm11, %v854_v46, %v863_v48  ;;  %v2457_v46 = vld [vmem:[#allocation5 + $0x5d4] ss:$8 sps:$4 sm:$0xff]   ;;  %v2460_v48 = vld [vmem:[#allocation5 + $0x5e4] ss:$8 sps:$4 sm:$0xff]   ;;  %v2458_v49 = vld [vmem:[#allocation5 + $0x5e0] ss:$8 sps:$4 sm:$0xff]  }
 0x37d   :  { %v869_v56 = vpack.c.bf16 %v867_v55, %v865_v53  ;;  %v2463_v50 = vld [vmem:[#allocation5 + $0x5f4] ss:$8 sps:$4 sm:$0xff]   ;;  %v2464_v53 = vld [vmem:[#allocation5 + $0x600] ss:$8 sps:$4 sm:$0xff]   ;;  %v2466_v55 = vld [vmem:[#allocation5 + $0x604] ss:$8 sps:$4 sm:$0xff]  }
 0x37e   :  { %1865 = vmatprep.subr.bf16.mxu0 %v2466_v55 }
 0x37f   :  { %1108 = vmatprep.mubr.bf16.mxu1 %v869_v56  ;;  %v2469_v56 = vld [vmem:[#allocation5 + $0x614] ss:$8 sps:$4 sm:$0xff]  }
 0x380   :  { %1109 = vmatmul.mubr.bf16.vlgmr.msra.gmra.mrb[4].mxu1 %v868_v51  ;;  %v2461_v51 = vld [vmem:[#allocation5 + $0x5f0] ss:$8 sps:$4 sm:$0xff]  }
 0x381   :  { %1603 = vmatpush1.bf16.msra.mxu1 %v2416_v63  ;;  %v2476_v63 = vld [vmem:[#allocation5 + $0x640] ss:$8 sps:$4 sm:$0xff]  }
 0x382   :  { %1604 = vmatprep.subr.bf16.mxu1 %v2421_v4  ;;  %v2479_v4 = vld [vmem:[#allocation5 + $0x650] ss:$8 sps:$4 sm:$0xff]  }
 0x385   :  { %1605 = vmatpush1.bf16.msra.mxu1 %v2419_v6  ;;  %v2484_v6 = vld [vmem:[#allocation5 + $0x664] ss:$8 sps:$4 sm:$0xff]  }
 0x386   :  { %1606 = vmatprep.subr.bf16.mxu1 %v2424_v7  ;;  %v2482_v7 = vld [vmem:[#allocation5 + $0x660] ss:$8 sps:$4 sm:$0xff]  }
 0x389   :  { %1607 = vmatpush1.bf16.msra.mxu1 %v2422_v8  ;;  %v2487_v8 = vld [vmem:[#allocation5 + $0x674] ss:$8 sps:$4 sm:$0xff]  }
 0x38a   :  { %1608 = vmatprep.subr.bf16.mxu1 %v2427_v9  ;;  %v2485_v9 = vld [vmem:[#allocation5 + $0x670] ss:$8 sps:$4 sm:$0xff]  }
 0x38d   :  { %1609 = vmatpush1.bf16.msra.mxu1 %v2425_v10  ;;  %v2490_v10 = vld [vmem:[#allocation5 + $0x684] ss:$8 sps:$4 sm:$0xff]  }
 0x38e   :  { %1610 = vmatprep.subr.bf16.mxu1 %v2430_v11  ;;  %v2488_v11 = vld [vmem:[#allocation5 + $0x680] ss:$8 sps:$4 sm:$0xff]  }
 0x391   :  { %1611 = vmatpush1.bf16.msra.mxu1 %v2428_v12  ;;  %v2493_v12 = vld [vmem:[#allocation5 + $0x694] ss:$8 sps:$4 sm:$0xff]  }
 0x392   :  { %1612 = vmatprep.subr.bf16.mxu1 %v2433_v13  ;;  %v2491_v13 = vld [vmem:[#allocation5 + $0x690] ss:$8 sps:$4 sm:$0xff]  }
 0x395   :  { %1613 = vmatpush1.bf16.msra.mxu1 %v2431_v14  ;;  %v2496_v14 = vld [vmem:[#allocation5 + $0x6a4] ss:$8 sps:$4 sm:$0xff]  }
 0x396   :  { %1614 = vmatprep.subr.bf16.mxu1 %v2436_v15  ;;  %v2494_v15 = vld [vmem:[#allocation5 + $0x6a0] ss:$8 sps:$4 sm:$0xff]  }
 0x399   :  { %1615 = vmatpush1.bf16.msra.mxu1 %v2434_v16  ;;  %v2499_v16 = vld [vmem:[#allocation5 + $0x6b4] ss:$8 sps:$4 sm:$0xff]  }
 0x39a   :  { %1616 = vmatprep.subr.bf16.mxu1 %v2439_v17  ;;  %v2497_v17 = vld [vmem:[#allocation5 + $0x6b0] ss:$8 sps:$4 sm:$0xff]  }
 0x39d   :  { %1617 = vmatpush1.bf16.msra.mxu1 %v2437_v18  ;;  %v2502_v18 = vld [vmem:[#allocation5 + $0x6c4] ss:$8 sps:$4 sm:$0xff]  }
 0x39e   :  { %1618 = vmatprep.subr.bf16.mxu1 %v2442_v19  ;;  %v2500_v19 = vld [vmem:[#allocation5 + $0x6c0] ss:$8 sps:$4 sm:$0xff]  }
 0x3a1   :  { %1619 = vmatpush1.bf16.msra.mxu1 %v2440_v20  ;;  %v1167_v20 = vld [vmem:[#allocation7 + $0x8] sm:$0x3] }
 0x3a2   :  { %1620 = vmatprep.subr.bf16.mxu1 %v2445_v21  ;;  %v1172_v21 = vrot.slane %v1167_v20, %v2699_v52 }
 0x3a5   :  { %1621 = vmatpush1.bf16.msra.mxu1 %v2443_v22  ;;  %v1176_v22 = vrot.slane %v1167_v20, %v2701_v54 }
 0x3a6   :  { %1622 = vmatprep.subr.bf16.mxu1 %v2448_v23 }
 0x3a9   :  { %1623 = vmatpush1.bf16.msra.mxu1 %v2446_v24 }
 0x3aa   :  { %1624 = vmatprep.subr.bf16.mxu1 %v2451_v25 }
 0x3ad   :  { %1625 = vmatpush1.bf16.msra.mxu1 %v2449_v26 }
 0x3ae   :  { %1626 = vmatprep.subr.bf16.mxu1 %v2454_v1 }
 0x3b1   :  { %1627 = vmatpush1.bf16.msra.mxu1 %v2452_v5 }
 0x3b2   :  { %1628 = vmatprep.subr.bf16.mxu1 %v2457_v46 }
 0x3b5   :  { %1629 = vmatpush1.bf16.msra.mxu1 %v2455_v47 }
 0x3b6   :  { %1630 = vmatprep.subr.bf16.mxu1 %v2460_v48 }
 0x3b9   :  { %1631 = vmatpush1.bf16.msra.mxu1 %v2458_v49 }
 0x3ba   :  { %1632 = vmatprep.subr.bf16.mxu1 %v2463_v50 }
 0x3bd   :  { %1633 = vmatpush1.bf16.msra.mxu1 %v2461_v51 }
 0x453   :  { %v1110_v28 = vpop.f32.mrb[4].mxu1 }
 0x454   :  { %v1111_v29 = vadd.f32 %v1110_v28, %v909_v27  ;;  %v1112_v30 = vpop.f32.mrb[5].mxu1 }
 0x455   :  { %v1113_v31 = vadd.f32 %v1112_v30, %v913_v2  ;;  %v1114_v32 = vpop.f32.mrb[6].mxu1 }
 0x456   :  { %v1123_v33 = vmul.f32 0.2, %v1111_v29  ;;  %v1115_v34 = vadd.f32 %v1114_v32, %v909_v27  ;;  %v1116_v35 = vpop.f32.mrb[7].mxu1  ;;  %vm1119_vm12 = vcmp.gt.f32.partialorder %v1111_v29, 0.0 }
 0x457   :  { %v1124_v36 = vmul.f32 0.2, %v1113_v31  ;;  %v1117_v37 = vadd.f32 %v1116_v35, %v913_v2  ;;  %vm1120_vm13 = vcmp.gt.f32.partialorder %v1113_v31, 0.0 }
 0x458   :  { %vm1121_vm14 = vcmp.gt.f32.partialorder %v1115_v34, 0.0  ;;  %v1125_v38 = vmul.f32 0.2, %v1115_v34  ;;  %v1127_v40 = vsel %vm1119_vm12, %v1111_v29, %v1123_v33 }
 0x459   :  { %vm1122_vm15 = vcmp.gt.f32.partialorder %v1117_v37, 0.0  ;;  %v1126_v39 = vmul.f32 0.2, %v1117_v37  ;;  %v1128_v43 = vsel %vm1120_vm13, %v1113_v31, %v1124_v36 }
 0x45a   :  { %v1129_v41 = vsel %vm1121_vm14, %v1115_v34, %v1125_v38  ;;  %v2503_v38 = vld [vmem:[#allocation5 + $0x6d0] ss:$8 sps:$4 sm:$0xff]  }
 0x45b   :  { %v1131_v42 = vpack.c.bf16 %v1129_v41, %v1127_v40  ;;  %v1130_v44 = vsel %vm1122_vm15, %v1117_v37, %v1126_v39  ;;  %v2505_v37 = vld [vmem:[#allocation5 + $0x6d4] ss:$8 sps:$4 sm:$0xff]   ;;  %v2508_v39 = vld [vmem:[#allocation5 + $0x6e4] ss:$8 sps:$4 sm:$0xff]   ;;  %v2506_v40 = vld [vmem:[#allocation5 + $0x6e0] ss:$8 sps:$4 sm:$0xff]  }
 0x45c   :  { %v1132_v45 = vpack.c.bf16 %v1130_v44, %v1128_v43  ;;  %v2511_v41 = vld [vmem:[#allocation5 + $0x6f4] ss:$8 sps:$4 sm:$0xff]   ;;  %v1430_v43 = vld [vmem:[#allocation7 + $0xa] sm:$0x3] }
 0x45d   :  { %v1435_v44 = vrot.slane %v1430_v43, %v2699_v52 }
 0x45e   :  { %1371 = vmatprep.mubr.bf16.mxu0 %v1132_v45  ;;  %v1439_v45 = vrot.slane %v1430_v43, %v2701_v54 }
 0x45f   :  { %1372 = vmatmul.mubr.bf16.vlgmr.msra.gmra.mrb[8].mxu0 %v1131_v42  ;;  %v2509_v42 = vld [vmem:[#allocation5 + $0x6f0] ss:$8 sps:$4 sm:$0xff]  }
 0x460   :  { %1866 = vmatpush1.bf16.msra.mxu0 %v2464_v53 }
 0x461   :  { %1867 = vmatprep.subr.bf16.mxu0 %v2469_v56 }
 0x464   :  { %1868 = vmatpush1.bf16.msra.mxu0 %v2467_v57 }
 0x465   :  { %1869 = vmatprep.subr.bf16.mxu0 %v2472_v58 }
 0x468   :  { %1870 = vmatpush1.bf16.msra.mxu0 %v2470_v59 }
 0x469   :  { %1871 = vmatprep.subr.bf16.mxu0 %v2475_v60 }
 0x46c   :  { %1872 = vmatpush1.bf16.msra.mxu0 %v2473_v61 }
 0x46d   :  { %1873 = vmatprep.subr.bf16.mxu0 %v2478_v62 }
 0x470   :  { %1874 = vmatpush1.bf16.msra.mxu0 %v2476_v63 }
 0x471   :  { %1875 = vmatprep.subr.bf16.mxu0 %v2481_v3 }
 0x474   :  { %1876 = vmatpush1.bf16.msra.mxu0 %v2479_v4 }
 0x475   :  { %1877 = vmatprep.subr.bf16.mxu0 %v2484_v6  ;;  %v1693_v6 = vld [vmem:[#allocation7 + $0xc] sm:$0x3] }
 0x478   :  { %1878 = vmatpush1.bf16.msra.mxu0 %v2482_v7  ;;  %v1698_v7 = vrot.slane %v1693_v6, %v2699_v52 }
 0x479   :  { %1879 = vmatprep.subr.bf16.mxu0 %v2487_v8  ;;  %v1702_v8 = vrot.slane %v1693_v6, %v2701_v54 }
 0x47c   :  { %1880 = vmatpush1.bf16.msra.mxu0 %v2485_v9 }
 0x47d   :  { %1881 = vmatprep.subr.bf16.mxu0 %v2490_v10 }
 0x480   :  { %1882 = vmatpush1.bf16.msra.mxu0 %v2488_v11 }
 0x481   :  { %1883 = vmatprep.subr.bf16.mxu0 %v2493_v12 }
 0x484   :  { %1884 = vmatpush1.bf16.msra.mxu0 %v2491_v13 }
 0x485   :  { %1885 = vmatprep.subr.bf16.mxu0 %v2496_v14 }
 0x488   :  { %1886 = vmatpush1.bf16.msra.mxu0 %v2494_v15 }
 0x489   :  { %1887 = vmatprep.subr.bf16.mxu0 %v2499_v16 }
 0x48c   :  { %1888 = vmatpush1.bf16.msra.mxu0 %v2497_v17 }
 0x48d   :  { %1889 = vmatprep.subr.bf16.mxu0 %v2502_v18 }
 0x490   :  { %1890 = vmatpush1.bf16.msra.mxu0 %v2500_v19 }
 0x491   :  { %1891 = vmatprep.subr.bf16.mxu0 %v2505_v37 }
 0x494   :  { %1892 = vmatpush1.bf16.msra.mxu0 %v2503_v38 }
 0x495   :  { %1893 = vmatprep.subr.bf16.mxu0 %v2508_v39 }
 0x498   :  { %1894 = vmatpush1.bf16.msra.mxu0 %v2506_v40 }
 0x499   :  { %1895 = vmatprep.subr.bf16.mxu0 %v2511_v41 }
 0x49c   :  { %1896 = vmatpush1.bf16.msra.mxu0 %v2509_v42 }
 0x532   :  { %v1373_v23 = vpop.f32.mrb[8].mxu0 }
 0x533   :  { %v1374_v24 = vadd.f32 %v1373_v23, %v1172_v21  ;;  %v1375_v25 = vpop.f32.mrb[9].mxu0 }
 0x534   :  { %v1376_v26 = vadd.f32 %v1375_v25, %v1176_v22  ;;  %v1377_v1 = vpop.f32.mrb[10].mxu0 }
 0x535   :  { %v1386_v5 = vmul.f32 0.2, %v1374_v24  ;;  %v1378_v0 = vadd.f32 %v1377_v1, %v1172_v21  ;;  %v1379_v27 = vpop.f32.mrb[11].mxu0  ;;  %vm1382_vm0 = vcmp.gt.f32.partialorder %v1374_v24, 0.0 }
 0x536   :  { %v1387_v2 = vmul.f32 0.2, %v1376_v26  ;;  %v1380_v28 = vadd.f32 %v1379_v27, %v1176_v22  ;;  %vm1383_vm1 = vcmp.gt.f32.partialorder %v1376_v26, 0.0 }
 0x537   :  { %vm1384_vm2 = vcmp.gt.f32.partialorder %v1378_v0, 0.0  ;;  %v1388_v29 = vmul.f32 0.2, %v1378_v0  ;;  %v1390_v31 = vsel %vm1382_vm0, %v1374_v24, %v1386_v5 }
 0x538   :  { %vm1385_vm3 = vcmp.gt.f32.partialorder %v1380_v28, 0.0  ;;  %v1389_v30 = vmul.f32 0.2, %v1380_v28  ;;  %v1391_v34 = vsel %vm1383_vm1, %v1376_v26, %v1387_v2 }
 0x539   :  { %v1392_v32 = vsel %vm1384_vm2, %v1378_v0, %v1388_v29 }
 0x53a   :  { %v1394_v33 = vpack.c.bf16 %v1392_v32, %v1390_v31  ;;  %v1393_v35 = vsel %vm1385_vm3, %v1380_v28, %v1389_v30 }
 0x53b   :  { %v1395_v36 = vpack.c.bf16 %v1393_v35, %v1391_v34 }
 0x53d   :  { %1634 = vmatprep.mubr.bf16.mxu1 %v1395_v36 }
 0x53e   :  { %1635 = vmatmul.mubr.bf16.vlgmr.msra.gmra.mrb[8].mxu1 %v1394_v33 }
 0x611   :  { %v1636_v46 = vpop.f32.mrb[8].mxu1 }
 0x612   :  { %v1637_v47 = vadd.f32 %v1636_v46, %v1435_v44  ;;  %v1638_v48 = vpop.f32.mrb[9].mxu1 }
 0x613   :  { %v1639_v49 = vadd.f32 %v1638_v48, %v1439_v45  ;;  %v1640_v50 = vpop.f32.mrb[10].mxu1 }
 0x614   :  { %v1649_v51 = vmul.f32 0.2, %v1637_v47  ;;  %v1641_v53 = vadd.f32 %v1640_v50, %v1435_v44  ;;  %v1642_v55 = vpop.f32.mrb[11].mxu1  ;;  %vm1645_vm4 = vcmp.gt.f32.partialorder %v1637_v47, 0.0 }
 0x615   :  { %v1650_v56 = vmul.f32 0.2, %v1639_v49  ;;  %v1643_v57 = vadd.f32 %v1642_v55, %v1439_v45  ;;  %vm1646_vm5 = vcmp.gt.f32.partialorder %v1639_v49, 0.0 }
 0x616   :  { %vm1647_vm6 = vcmp.gt.f32.partialorder %v1641_v53, 0.0  ;;  %v1651_v58 = vmul.f32 0.2, %v1641_v53  ;;  %v1653_v60 = vsel %vm1645_vm4, %v1637_v47, %v1649_v51 }
 0x617   :  { %vm1648_vm7 = vcmp.gt.f32.partialorder %v1643_v57, 0.0  ;;  %v1652_v59 = vmul.f32 0.2, %v1643_v57  ;;  %v1654_v63 = vsel %vm1646_vm5, %v1639_v49, %v1650_v56 }
 0x618   :  { %v1655_v61 = vsel %vm1647_vm6, %v1641_v53, %v1651_v58 }
 0x619   :  { %v1657_v62 = vpack.c.bf16 %v1655_v61, %v1653_v60  ;;  %v1656_v3 = vsel %vm1648_vm7, %v1643_v57, %v1652_v59 }
 0x61a   :  { %v1658_v4 = vpack.c.bf16 %v1656_v3, %v1654_v63 }
 0x61c   :  { %1897 = vmatprep.mubr.bf16.mxu0 %v1658_v4 }
 0x61d   :  { %1898 = vmatmul.mubr.bf16.vlgmr.msra.gmra.mrb[12].mxu0 %v1657_v62 }
 0x6f0   :  { %v1899_v9 = vpop.f32.mrb[12].mxu0 }
 0x6f1   :  { %v1900_v10 = vadd.f32 %v1899_v9, %v1698_v7  ;;  %v1901_v11 = vpop.f32.mrb[13].mxu0 }
 0x6f2   :  { %v1902_v12 = vadd.f32 %v1901_v11, %v1702_v8  ;;  %v1903_v13 = vpop.f32.mrb[14].mxu0 }
 0x6f3   :  { %vm1908_vm8 = vcmp.gt.f32.partialorder %v1900_v10, 0.0  ;;  %v1912_v14 = vmul.f32 0.2, %v1900_v10  ;;  %v1904_v15 = vadd.f32 %v1903_v13, %v1698_v7  ;;  %v1905_v16 = vpop.f32.mrb[15].mxu0 }
 0x6f4   :  { %vm1909_vm9 = vcmp.gt.f32.partialorder %v1902_v12, 0.0  ;;  %v1913_v17 = vmul.f32 0.2, %v1902_v12  ;;  %v1906_v18 = vadd.f32 %v1905_v16, %v1702_v8 }
 0x6f5   :  { %v1916_v19 = vsel %vm1908_vm8, %v1900_v10, %v1912_v14  ;;  %vm1910_vm10 = vcmp.gt.f32.partialorder %v1904_v15, 0.0  ;;  %v1914_v20 = vmul.f32 0.2, %v1904_v15 }
 0x6f6   :  { %1920 = vst [vmem:[#allocation8] sm:$0xff] %v1916_v19  ;;  %v1917_v52 = vsel %vm1909_vm9, %v1902_v12, %v1913_v17  ;;  %vm1911_vm11 = vcmp.gt.f32.partialorder %v1906_v18, 0.0  ;;  %v1915_v54 = vmul.f32 0.2, %v1906_v18 }
 0x6f7   :  { %1921 = vst [vmem:[#allocation8 + $0x8] sm:$0xff] %v1917_v52  ;;  %v1918_v21 = vsel %vm1910_vm10, %v1904_v15, %v1914_v20 }
 0x6f8   :  { %1922 = vst [vmem:[#allocation8 + $0x10] sm:$0xff] %v1918_v21  ;;  %v1919_v22 = vsel %vm1911_vm11, %v1906_v18, %v1915_v54 }
 0x6f9   :  { %1923 = vst [vmem:[#allocation8 + $0x18] sm:$0xff] %v1919_v22 }
 0x6fa   :  { %2593 = shalt.err (!%p2590_p0)
}
 0x6fb   :  { %s2594_s29 = scalar_lea.hbm %s2735_s3, 512 }
 0x6fc   :  { %p2595_p1 = scmp.ne.s32.totalorder %s2735_s3, %s2594_s29  ;;  %p2598_p2 = scmp.lt.u32.totalorder %s2594_s29, %s2735_s3 }
 0x6fe   :  { %p2600_p3 = pnand %p2598_p2, %p2595_p1 }
 0x700   :  { %2603 = shalt.err (!%p2600_p3)
}
 0x701   :  { %1935 = dma.vmem_to_hbm [thread:$0]  %s1930_s25, 512, %s2735_s3, [#allocation4], %s2614_s1, %s2614_s1, %s2615_s9  }
 0x702   :  { %2608 = dma.done.wait [#allocation4], 512  }
 0x703   :  { %2609 = vsyncadd [#allocation4], 4294966784 }
 0x704   :  { %1939 = vsyncpa [#allocation3], 1 }
 0x705   :  { %1940 = vsyncpa [#allocation6], 1 }
 0x706   :  { %1941 = vsyncpa [#allocation4], 1 }

</bundles_post_ra>
